<compile_context>
chip_gen: v7x
topology: tpu7x:2x2x1
jax: 0.10.0
libtpu: 0.0.40
codegen_flags: <defaults>
</compile_context>

<pallas_src>
import functools

import jax
import jax.numpy as jnp
from jax.experimental import pallas as pl
from jax.experimental.pallas import tpu as pltpu


def _cam_head_kernel(x_ref, w_ref, logits_ref, feats_ref, *, n, hw):
    # x_ref:      (N*HW, C)   channels-last backbone features, batch folded into rows
    # w_ref:      (C, Kp)     1x1-conv weight, transposed and zero-padded to 128 lanes
    # logits_ref: (N, Kp)     GAP(classifier(x)) -- derived from feats (GAP commutes
    #                         with the 1x1 conv), so only one MXU pass is needed
    # feats_ref:  (N*HW, Kp)  per-pixel CAM features
    feats = jnp.dot(x_ref[...], w_ref[...], preferred_element_type=jnp.float32)
    feats_ref[...] = feats.astype(feats_ref.dtype)

    inv_hw = jnp.float32(1.0 / hw)
    for b in range(n):  # small static batch loop; sublane reduce (XLU), f32 math
        row = jnp.sum(feats[b * hw:(b + 1) * hw, :], axis=0, keepdims=True) * inv_hw
        logits_ref[b:b + 1, :] = row.astype(logits_ref.dtype)


def _gap_head_kernel(x_ref, w_ref, logits_ref, *, n, hw):
    # with_cam=False branch: GAP first (f32), then the 1x1-conv matmul.
    # No (HW, K) feats are computed or written back (~HW x fewer FLOPs, no big DMA).
    w = w_ref[...]
    inv_hw = jnp.float32(1.0 / hw)
    for b in range(n):
        xb = x_ref[b * hw:(b + 1) * hw, :]                                     # (HW, C)
        pooled = jnp.sum(xb.astype(jnp.float32), axis=0, keepdims=True) * inv_hw  # (1, C) f32
        logits_ref[b:b + 1, :] = jnp.dot(
            pooled.astype(w.dtype), w,
            preferred_element_type=jnp.float32).astype(logits_ref.dtype)


def classifier_head(features_nchw, w_conv, with_cam=False, compute_dtype=jnp.bfloat16):
    """Reproduces Classifier.forward starting from the stage5 feature maps.

    features_nchw: (N, C, H, W)  backbone output (PyTorch NCHW layout)
    w_conv:        (K, C, 1, 1)  nn.Conv2d(C, K, 1, bias=False) weight
    """
    N, C, H, W = features_nchw.shape
    K = w_conv.shape[0]
    HW = H * W
    NHW = N * HW
    Kp = 128 * pl.cdiv(K, 128)  # lane-dense output columns

    # layout glue: NCHW -> channels-last rows (N*HW, C); conv weight -> (C, Kp), zero-padded.
    x = jnp.transpose(features_nchw, (0, 2, 3, 1)).reshape(NHW, C).astype(compute_dtype)
    w = jnp.transpose(w_conv.reshape(K, C), (1, 0)).astype(compute_dtype)
    w = jnp.pad(w, ((0, 0), (0, Kp - K)))

    if with_cam:
        logits_p, feats_p = pl.pallas_call(
            functools.partial(_cam_head_kernel, n=N, hw=HW),
            out_shape=(
                jax.ShapeDtypeStruct((N, Kp), jnp.float32),
                jax.ShapeDtypeStruct((NHW, Kp), jnp.float32),
            ),
            grid=(1,),
            in_specs=[
                pl.BlockSpec((NHW, C), lambda i: (0, 0)),
                pl.BlockSpec((C, Kp), lambda i: (0, 0)),
            ],
            out_specs=(
                pl.BlockSpec((N, Kp), lambda i: (0, 0)),
                pl.BlockSpec((NHW, Kp), lambda i: (0, 0)),
            ),
            compiler_params=pltpu.CompilerParams(
                dimension_semantics=("arbitrary",)),
        )(x, w)
        logits = logits_p[:, :K]                                           # (N, K)
        cam = jnp.transpose(feats_p[:, :K].reshape(N, H, W, K), (0, 3, 1, 2))  # (N, K, H, W)
        return logits, cam

    logits_p = pl.pallas_call(
        functools.partial(_gap_head_kernel, n=N, hw=HW),
        out_shape=jax.ShapeDtypeStruct((N, Kp), jnp.float32),
        grid=(1,),
        in_specs=[
            pl.BlockSpec((NHW, C), lambda i: (0, 0)),
            pl.BlockSpec((C, Kp), lambda i: (0, 0)),
        ],
        out_specs=pl.BlockSpec((N, Kp), lambda i: (0, 0)),
        compiler_params=pltpu.CompilerParams(
            dimension_semantics=("arbitrary",)),
    )(x, w)
    return logits_p[:, :K]


if __name__ == "__main__":
    # Classifier: ResNet stage5 features -> 2048 channels; num_classes = 20.
    N, C, H, W = 2, 2048, 8, 8
    K = 20

    key = jax.random.PRNGKey(0)
    kf, kw = jax.random.split(key)

    # synthetic backbone features (stand-in for stage1..stage5 output)
    feats_nchw = jax.random.normal(kf, (N, C, H, W), dtype=jnp.float32)
    # deterministic classifier init (kaiming-normal-like 1x1 conv, no bias)
    w_conv = jax.random.normal(kw, (K, C, 1, 1), dtype=jnp.float32) * jnp.sqrt(2.0 / C)

    # with_cam=False path
    logits = classifier_head(feats_nchw, w_conv, with_cam=False)
    logits = jax.block_until_ready(logits)

    # with_cam=True path
    logits_cam, cam = classifier_head(feats_nchw, w_conv, with_cam=True)
    jax.block_until_ready((logits_cam, cam))

    # plain-JAX reference using the same bf16 inputs / f32 accumulation as the kernels
    x_bf = feats_nchw.astype(jnp.bfloat16)
    w_bf = w_conv.reshape(K, C).astype(jnp.bfloat16)
    cam_ref = jnp.einsum("nchw,kc->nkhw", x_bf, w_bf,
                         preferred_element_type=jnp.float32)              # (N, K, H, W)
    logits_cam_ref = jnp.mean(cam_ref, axis=(2, 3))                       # (N, K)
    pooled_ref = jnp.mean(x_bf.astype(jnp.float32), axis=(2, 3))          # (N, C) f32
    logits_ref = jnp.dot(pooled_ref.astype(jnp.bfloat16), w_bf.T,
                         preferred_element_type=jnp.float32)              # (N, K)

    assert logits.shape == (N, K)
    assert logits_cam.shape == (N, K)
    assert cam.shape == (N, K, H, W)
    assert jnp.allclose(logits, logits_ref, atol=5e-2, rtol=5e-2)
    assert jnp.allclose(logits_cam, logits_cam_ref, atol=5e-2, rtol=5e-2)
    assert jnp.allclose(cam, cam_ref, atol=5e-2, rtol=5e-2)

    print("KERNEL_OK")
</pallas_src>

<mosaic_0001>
module attributes {stable_mosaic.version = 11 : i64} {
  func.func @_gap_head_kernel(%arg0: i32, %arg1: memref<128x2048xbf16, #tpu.memory_space<vmem>>, %arg2: memref<2048x128xbf16, #tpu.memory_space<vmem>>, %arg3: memref<2x128xf32, #tpu.memory_space<vmem>>) attributes {dimension_semantics = [#tpu.dimension_semantics<arbitrary>], iteration_bounds = array<i64: 1>, scalar_prefetch = 0 : i64, scratch_operands = 0 : i64, tpu.core_type = #tpu.core_type<tc>, window_params = [{pipeline_mode = #tpu.pipeline_mode<synchronous>, transform_indices = @transform_0, window_bounds = array<i64: 128, 2048>}, {pipeline_mode = #tpu.pipeline_mode<synchronous>, transform_indices = @transform_1, window_bounds = array<i64: 2048, 128>}, {pipeline_mode = #tpu.pipeline_mode<synchronous>, transform_indices = @transform_2, window_bounds = array<i64: 2, 128>}]} {
    %c0 = arith.constant 0 : index
    %c0_0 = arith.constant 0 : index
    %0 = vector.load %arg2[%c0, %c0_0] : memref<2048x128xbf16, #tpu.memory_space<vmem>>, vector<2048x128xbf16>
    %c0_1 = arith.constant 0 : index
    %c0_2 = arith.constant 0 : index
    %1 = vector.load %arg1[%c0_1, %c0_2] : memref<128x2048xbf16, #tpu.memory_space<vmem>>, vector<64x2048xbf16>
    %2 = arith.extf %1 : vector<64x2048xbf16> to vector<64x2048xf32>
    %cst = arith.constant dense<0.000000e+00> : vector<2048xf32>
    %3 = vector.multi_reduction <add>, %2, %cst [0] : vector<64x2048xf32> to vector<2048xf32>
    %4 = vector.shape_cast %3 : vector<2048xf32> to vector<1x2048xf32>
    %cst_3 = arith.constant 1.562500e-02 : f32
    %5 = vector.broadcast %cst_3 : f32 to vector<1x2048xf32>
    %6 = arith.mulf %4, %5 : vector<1x2048xf32>
    %7 = arith.truncf %6 : vector<1x2048xf32> to vector<1x2048xbf16>
    %cst_4 = arith.constant dense<0.000000e+00> : vector<1x128xf32>
    %8 = tpu.matmul %7, %0, %cst_4 {dimension_numbers = #tpu.dot_dimension_numbers<[1], [0], [0], [1], [0, 0, 1, 1], [], []>} : vector<1x2048xbf16>, vector<2048x128xbf16>, vector<1x128xf32> -> vector<1x128xf32>
    %c0_5 = arith.constant 0 : index
    %c0_6 = arith.constant 0 : index
    %9 = vector.load %arg3[%c0_5, %c0_6] : memref<2x128xf32, #tpu.memory_space<vmem>>, vector<1x128xf32>
    tpu.vector_store %arg3[%c0_5, %c0_6], %8 {strides = array<i32>} : memref<2x128xf32, #tpu.memory_space<vmem>>, vector<1x128xf32>,
    %c64 = arith.constant 64 : index
    %c0_7 = arith.constant 0 : index
    %10 = vector.load %arg1[%c64, %c0_7] : memref<128x2048xbf16, #tpu.memory_space<vmem>>, vector<64x2048xbf16>
    %11 = arith.extf %10 : vector<64x2048xbf16> to vector<64x2048xf32>
    %cst_8 = arith.constant dense<0.000000e+00> : vector<2048xf32>
    %12 = vector.multi_reduction <add>, %11, %cst_8 [0] : vector<64x2048xf32> to vector<2048xf32>
    %13 = vector.shape_cast %12 : vector<2048xf32> to vector<1x2048xf32>
    %cst_9 = arith.constant 1.562500e-02 : f32
    %14 = vector.broadcast %cst_9 : f32 to vector<1x2048xf32>
    %15 = arith.mulf %13, %14 : vector<1x2048xf32>
    %16 = arith.truncf %15 : vector<1x2048xf32> to vector<1x2048xbf16>
    %cst_10 = arith.constant dense<0.000000e+00> : vector<1x128xf32>
    %17 = tpu.matmul %16, %0, %cst_10 {dimension_numbers = #tpu.dot_dimension_numbers<[1], [0], [0], [1], [0, 0, 1, 1], [], []>} : vector<1x2048xbf16>, vector<2048x128xbf16>, vector<1x128xf32> -> vector<1x128xf32>
    %c1 = arith.constant 1 : index
    %c0_11 = arith.constant 0 : index
    %18 = vector.load %arg3[%c1, %c0_11] : memref<2x128xf32, #tpu.memory_space<vmem>>, vector<1x128xf32>
    tpu.vector_store %arg3[%c1, %c0_11], %17 {strides = array<i32>} : memref<2x128xf32, #tpu.memory_space<vmem>>, vector<1x128xf32>,
    return
  }
  func.func @transform_0(%arg0: i32) -> (i32, i32) {
    %c0_i32 = arith.constant 0 : i32
    %c0_i32_0 = arith.constant 0 : i32
    %c0_i32_1 = arith.constant 0 : i32
    return %c0_i32, %c0_i32_0 : i32, i32
  }
  func.func @transform_1(%arg0: i32) -> (i32, i32) {
    %c0_i32 = arith.constant 0 : i32
    %c0_i32_0 = arith.constant 0 : i32
    %c0_i32_1 = arith.constant 0 : i32
    return %c0_i32, %c0_i32_0 : i32, i32
  }
  func.func @transform_2(%arg0: i32) -> (i32, i32) {
    %c0_i32 = arith.constant 0 : i32
    %c0_i32_0 = arith.constant 0 : i32
    %c0_i32_1 = arith.constant 0 : i32
    return %c0_i32, %c0_i32_0 : i32, i32
  }
}

</mosaic_0001>

<bundles_post_ra>
// kernel: tpu_custom_call.1
= control target key start
LH: loop header
LB: loop body
LE: loop exit
PB: predicated region body
PF: predicated region fallthrough
CT: control target
= control target key end

     0   :  { %7 = vsyncpa [#allocation3], 0  ;;  %s3861_s0 = inlined_call_operand.hbm [shape: bf16[128,2048], index: 0, kind: input, shape index: {}]   ;;  %s3862_s1 = inlined_call_operand.hbm [shape: bf16[2048,128], index: 1, kind: input, shape index: {}]   ;;  %s3863_s2 = inlined_call_operand.hbm [shape: f32[2,128], index: 2, kind: output, shape index: {}]  }
   0x1   :  { %8 = vsyncpa [#allocation6], 0 }
   0x2   :  { %9 = vsyncpa [#allocation4], 0  ;;  %s3401_s9 = smov [#allocation2]   ;;  %s3329_s13 = scalar_lea.hbm %s3861_s0, 16384 }
   0x3   :  { %s15_s10 = sshll.u32 %s3401_s9, 4  ;;  %p3330_p0 = scmp.ne.s32.totalorder %s3861_s0, %s3329_s13  ;;  %s16_s10 = int_to_ptr.vmem [resolvable:$true] %s15_s10 }
   0x4   :  { %p3333_p1 = scmp.lt.u32.totalorder %s3329_s13, %s3861_s0 }
   0x6   :  { %p3335_p2 = pnand %p3333_p1, %p3330_p0 }
   0x8   :  { %3338 = shalt.err (!%p3335_p2)
}
   0x9   :  { %s3339_s18 = scalar_lea.vmem %s16_s10, 16384  ;;  %p3344_p4 = scmp.lt.s32.totalorder %s16_s10, %s16_s10 }
   0xa   :  { %p3340_p3 = scmp.ne.s32.totalorder %s16_s10, %s3339_s18  ;;  %p3345_p5 = scmp.lt.s32.totalorder %s3339_s18, %s3339_s18 }
   0xc   :  { %p3346_p6 = por %p3345_p5, %p3344_p4 }
   0xe   :  { %p3347_p7 = pnand %p3346_p6, %p3340_p3 }
  0x10   :  { %3350 = shalt.err (!%p3347_p7)
}
  0x11   :  { %s3402_s19 = smov 1024   ;;  %s3403_s20 = smov 64  }
  0x12   :  { %21 = dma.hbm_to_vmem [thread:$0]  %s3861_s0, 16384, %s16_s10, [#allocation3], %s3402_s19, %s3402_s19, %s3403_s20  }
  0x13   :  { %s3404_s23 = smov [#allocation5]   ;;  %s3351_s27 = scalar_lea.hbm %s3862_s1, 16384 }
  0x14   :  { %s27_s24 = sshll.u32 %s3404_s23, 4  ;;  %p3352_p8 = scmp.ne.s32.totalorder %s3862_s1, %s3351_s27  ;;  %s28_s24 = int_to_ptr.vmem [resolvable:$true] %s27_s24 }
  0x15   :  { %p3355_p9 = scmp.lt.u32.totalorder %s3351_s27, %s3862_s1 }
  0x17   :  { %p3357_p10 = pnand %p3355_p9, %p3352_p8 }
  0x19   :  { %3360 = shalt.err (!%p3357_p10)
}
  0x1a   :  { %s3361_s4 = scalar_lea.vmem %s28_s24, 16384  ;;  %p3366_p12 = scmp.lt.s32.totalorder %s28_s24, %s28_s24 }
  0x1b   :  { %p3362_p11 = scmp.ne.s32.totalorder %s28_s24, %s3361_s4  ;;  %p3367_p13 = scmp.lt.s32.totalorder %s3361_s4, %s3361_s4 }
  0x1d   :  { %p3368_p0 = por %p3367_p13, %p3366_p12 }
  0x1f   :  { %p3369_p1 = pnand %p3368_p0, %p3362_p11 }
  0x21   :  { %3372 = shalt.err (!%p3369_p1)
}
  0x22   :  { %s3405_s0 = smov 4  }
  0x23   :  { %33 = dma.hbm_to_vmem [thread:$0]  %s3862_s1, 16384, %s28_s24, [#allocation6], %s3403_s20, %s3403_s20, %s3405_s0  }
  0x24   :  { %3395 = dma.done.wait [#allocation3], 16384  }
  0x25   :  { %3396 = vsyncadd [#allocation3], 4294950912 }
  0x26   :  { %3397 = dma.done.wait [#allocation6], 16384  }
  0x27   :  { %3398 = vsyncadd [#allocation6], 4294950912  ;;  %v3073_v0 = vld [vmem:[#allocation5 + $0x40] sm:$0xff]   ;;  %v3077_v4 = vld [vmem:[#allocation5 + $0x48] sm:$0xff]   ;;  %s3406_s1 = smov [#allocation7]  }
  0x28   :  { %v3074_v1 = vld [vmem:[#allocation5 + $0xc0] sm:$0xff]   ;;  %2715 = vmatprep.subr.bf16.mxu0 %v3073_v0  ;;  %v3078_v5 = vld [vmem:[#allocation5 + $0xc8] sm:$0xff]   ;;  %v3081_v8 = vld [vmem:[#allocation5 + $0x50] sm:$0xff]   ;;  %s2577_s7 = sshll.u32 %s3406_s1, 4  ;;  %s2578_s7 = int_to_ptr.vmem [resolvable:$true] %s2577_s7 }
  0x29   :  { %v3075_v2 = vld [vmem:[#allocation5] sm:$0xff]   ;;  %2737 = vmatprep.subr.bf16.mxu1 %v3074_v1  ;;  %v3079_v6 = vld [vmem:[#allocation5 + $0x8] sm:$0xff]   ;;  %v3082_v9 = vld [vmem:[#allocation5 + $0xd0] sm:$0xff]   ;;  %s3373_s8 = scalar_lea.vmem %s2578_s7, 32  ;;  %p3378_p3 = scmp.lt.s32.totalorder %s2578_s7, %s2578_s7 }
  0x2a   :  { %v3076_v3 = vld [vmem:[#allocation5 + $0x80] sm:$0xff]   ;;  %2716 = vmatpush3.bf16.msra.mxu0 %v3075_v2  ;;  %v3080_v7 = vld [vmem:[#allocation5 + $0x88] sm:$0xff]   ;;  %v3083_v10 = vld [vmem:[#allocation5 + $0x10] sm:$0xff]   ;;  %p3374_p2 = scmp.ne.s32.totalorder %s2578_s7, %s3373_s8  ;;  %p3379_p4 = scmp.lt.s32.totalorder %s3373_s8, %s3373_s8 }
  0x2b   :  { %2738 = vmatpush3.bf16.msra.mxu1 %v3076_v3  ;;  %2717 = vmatprep.subr.bf16.mxu0 %v3077_v4  ;;  %v3084_v11 = vld [vmem:[#allocation5 + $0x90] sm:$0xff]   ;;  %v3085_v12 = vld [vmem:[#allocation5 + $0x58] sm:$0xff]   ;;  %v3089_v16 = vld [vmem:[#allocation5 + $0x60] sm:$0xff]  }
  0x2c   :  { %2739 = vmatprep.subr.bf16.mxu1 %v3078_v5  ;;  %v3086_v13 = vld [vmem:[#allocation5 + $0xd8] sm:$0xff]   ;;  %v3090_v17 = vld [vmem:[#allocation5 + $0xe0] sm:$0xff]   ;;  %v3093_v20 = vld [vmem:[#allocation5 + $0x68] sm:$0xff]   ;;  %p3380_p5 = por %p3379_p4, %p3378_p3 }
  0x2d   :  { %v3087_v14 = vld [vmem:[#allocation5 + $0x18] sm:$0xff]   ;;  %v3091_v18 = vld [vmem:[#allocation5 + $0x20] sm:$0xff]   ;;  %v3094_v21 = vld [vmem:[#allocation5 + $0xe8] sm:$0xff]  }
  0x2e   :  { %2718 = vmatpush3.bf16.msra.mxu0 %v3079_v6  ;;  %v3088_v15 = vld [vmem:[#allocation5 + $0x98] sm:$0xff]   ;;  %v3092_v19 = vld [vmem:[#allocation5 + $0xa0] sm:$0xff]   ;;  %v3095_v22 = vld [vmem:[#allocation5 + $0x28] sm:$0xff]   ;;  %p3381_p6 = pnand %p3380_p5, %p3374_p2 }
  0x2f   :  { %2740 = vmatpush3.bf16.msra.mxu1 %v3080_v7  ;;  %2719 = vmatprep.subr.bf16.mxu0 %v3081_v8  ;;  %v3096_v23 = vld [vmem:[#allocation5 + $0xa8] sm:$0xff]   ;;  %v3097_v24 = vld [vmem:[#allocation5 + $0x70] sm:$0xff]   ;;  %v3101_v28 = vld [vmem:[#allocation5 + $0x78] sm:$0xff]  }
  0x30   :  { %2741 = vmatprep.subr.bf16.mxu1 %v3082_v9  ;;  %v3098_v25 = vld [vmem:[#allocation5 + $0xf0] sm:$0xff]   ;;  %v3102_v29 = vld [vmem:[#allocation5 + $0xf8] sm:$0xff]   ;;  %v297_v32 = vld [vmem:[#allocation2] sm:$0xff] }
  0x31   :  { %v3099_v26 = vld [vmem:[#allocation5 + $0x30] sm:$0xff]   ;;  %v3103_v30 = vld [vmem:[#allocation5 + $0x38] sm:$0xff]   ;;  %v305_v33 = vld [vmem:[#allocation2 + $0x40] sm:$0xff]  ;;  %v362_v35 = vunpack.c.h.bf16 %v297_v32  ;;  %v361_v44 = vunpack.c.l.bf16 %v297_v32 }
  0x32   :  { %2720 = vmatpush3.bf16.msra.mxu0 %v3083_v10  ;;  %v3100_v27 = vld [vmem:[#allocation5 + $0xb0] sm:$0xff]   ;;  %v3104_v31 = vld [vmem:[#allocation5 + $0xb8] sm:$0xff]   ;;  %v313_v34 = vld [vmem:[#allocation2 + $0x80] sm:$0xff]  ;;  %v378_v36 = vunpack.c.h.bf16 %v305_v33  ;;  %v377_v50 = vunpack.c.l.bf16 %v305_v33 }
  0x33   :  { %2742 = vmatpush3.bf16.msra.mxu1 %v3084_v11  ;;  %2721 = vmatprep.subr.bf16.mxu0 %v3085_v12  ;;  %v321_v37 = vld [vmem:[#allocation2 + $0xc0] sm:$0xff]  ;;  %v298_v38 = vld [vmem:[#allocation2 + $0x8] sm:$0xff]  ;;  %v394_v39 = vunpack.c.h.bf16 %v313_v34  ;;  %v393_v59 = vunpack.c.l.bf16 %v313_v34 }
  0x34   :  { %2743 = vmatprep.subr.bf16.mxu1 %v3086_v13  ;;  %v306_v40 = vld [vmem:[#allocation2 + $0x48] sm:$0xff]  ;;  %v329_v41 = vld [vmem:[#allocation2 + $0x100] sm:$0xff]  ;;  %v410_v45 = vunpack.c.h.bf16 %v321_v37  ;;  %v502_v46 = vadd.f32 %v378_v36, %v362_v35  ;;  %v364_v48 = vunpack.c.h.bf16 %v298_v38  ;;  %v363_v51 = vunpack.c.l.bf16 %v298_v38 }
  0x35   :  { %v3446_v42 = vld [vmem:[#allocation2 + $0x140] sm:$0xff]  ;;  %v314_v43 = vld [vmem:[#allocation2 + $0x88] sm:$0xff]  ;;  %v379_v52 = vunpack.c.l.bf16 %v306_v40  ;;  %v380_v53 = vunpack.c.h.bf16 %v306_v40  ;;  %v426_v55 = vunpack.c.h.bf16 %v329_v41  ;;  %v409_v3 = vunpack.c.l.bf16 %v321_v37 }
  0x36   :  { %2722 = vmatpush3.bf16.msra.mxu0 %v3087_v14  ;;  %v322_v47 = vld [vmem:[#allocation2 + $0xc8] sm:$0xff]  ;;  %v345_v49 = vld [vmem:[#allocation2 + $0x180] sm:$0xff]  ;;  %v503_v56 = vadd.f32 %v502_v46, %v394_v39  ;;  %v396_v57 = vunpack.c.h.bf16 %v314_v43  ;;  %v395_v61 = vunpack.c.l.bf16 %v314_v43  ;;  %v442_v63 = vunpack.c.h.bf16 %v3446_v42 }
  0x37   :  { %2744 = vmatpush3.bf16.msra.mxu1 %v3088_v15  ;;  %2723 = vmatprep.subr.bf16.mxu0 %v3089_v16  ;;  %v3105_v54 = vld [vmem:[#allocation5 + $0x140] sm:$0xff]   ;;  %v330_v60 = vld [vmem:[#allocation2 + $0x108] sm:$0xff]  ;;  %v412_v1 = vunpack.c.h.bf16 %v322_v47  ;;  %v528_v2 = vadd.f32 %v380_v53, %v364_v48  ;;  %v411_v5 = vunpack.c.l.bf16 %v322_v47  ;;  %v489_v6 = vadd.f32 %v377_v50, %v361_v44 }
  0x38   :  { %2745 = vmatprep.subr.bf16.mxu1 %v3090_v17  ;;  %v3106_v58 = vld [vmem:[#allocation5 + $0x1c0] sm:$0xff]   ;;  %v504_v0 = vadd.f32 %v503_v56, %v410_v45  ;;  %v338_v4 = vld [vmem:[#allocation2 + $0x148] sm:$0xff]  ;;  %v515_v7 = vadd.f32 %v379_v52, %v363_v51  ;;  %v458_v8 = vunpack.c.h.bf16 %v345_v49  ;;  %v428_v10 = vunpack.c.h.bf16 %v330_v60 }
  0x39   :  { %v353_v62 = vld [vmem:[#allocation2 + $0x1c0] sm:$0xff]  ;;  %v529_v11 = vadd.f32 %v528_v2, %v396_v57  ;;  %v425_v12 = vunpack.c.l.bf16 %v329_v41  ;;  %v346_v13 = vld [vmem:[#allocation2 + $0x188] sm:$0xff]  ;;  %v427_v14 = vunpack.c.l.bf16 %v330_v60  ;;  %v490_v15 = vadd.f32 %v489_v6, %v393_v59 }
  0x3a   :  { %2724 = vmatpush3.bf16.msra.mxu0 %v3091_v18  ;;  %v505_v9 = vadd.f32 %v504_v0, %v426_v55  ;;  %v516_v16 = vadd.f32 %v515_v7, %v395_v61  ;;  %v474_v17 = vunpack.c.h.bf16 %v353_v62  ;;  %v473_v36 = vunpack.c.l.bf16 %v353_v62 }
  0x3b   :  { %2746 = vmatpush3.bf16.msra.mxu1 %v3092_v19  ;;  %2725 = vmatprep.subr.bf16.mxu0 %v3093_v20  ;;  %v444_v19 = vunpack.c.h.bf16 %v338_v4  ;;  %v530_v20 = vadd.f32 %v529_v11, %v412_v1 }
  0x3c   :  { %2747 = vmatprep.subr.bf16.mxu1 %v3094_v21  ;;  %v506_v18 = vadd.f32 %v505_v9, %v442_v63  ;;  %v441_v21 = vunpack.c.l.bf16 %v3446_v42  ;;  %v3107_v9 = vld [vmem:[#allocation5 + $0x100] sm:$0xff]  }
  0x3e   :  { %2726 = vmatpush3.bf16.msra.mxu0 %v3095_v22  ;;  %v354_v22 = vld [vmem:[#allocation2 + $0x1c8] sm:$0xff] }
  0x3f   :  { %2748 = vmatpush3.bf16.msra.mxu1 %v3096_v23  ;;  %2727 = vmatprep.subr.bf16.mxu0 %v3097_v24  ;;  %v443_v23 = vunpack.c.l.bf16 %v338_v4  ;;  %v491_v24 = vadd.f32 %v490_v15, %v409_v3  ;;  %v476_v34 = vunpack.c.h.bf16 %v354_v22  ;;  %v475_v37 = vunpack.c.l.bf16 %v354_v22 }
  0x40   :  { %2749 = vmatprep.subr.bf16.mxu1 %v3098_v25  ;;  %v517_v25 = vadd.f32 %v516_v16, %v411_v5 }
  0x42   :  { %2728 = vmatpush3.bf16.msra.mxu0 %v3099_v26  ;;  %v507_v26 = vadd.f32 %v506_v18, %v458_v8  ;;  %v518_v32 = vadd.f32 %v517_v25, %v427_v14  ;;  %v299_v18 = vld [vmem:[#allocation2 + $0x10] sm:$0xff] }
  0x43   :  { %2750 = vmatpush3.bf16.msra.mxu1 %v3100_v27  ;;  %2729 = vmatprep.subr.bf16.mxu0 %v3101_v28  ;;  %v460_v27 = vunpack.c.h.bf16 %v346_v13  ;;  %v531_v28 = vadd.f32 %v530_v20, %v428_v10  ;;  %v3450_v20 = vld [vmem:[#allocation2 + $0x90] sm:$0xff] }
  0x44   :  { %2751 = vmatprep.subr.bf16.mxu1 %v3102_v29  ;;  %v457_v29 = vunpack.c.l.bf16 %v345_v49  ;;  %v508_v33 = vadd.f32 %v507_v26, %v474_v17  ;;  %v519_v39 = vadd.f32 %v518_v32, %v443_v23  ;;  %v3110_v17 = vld [vmem:[#allocation5 + $0x1c8] sm:$0xff]   ;;  %v3452_v25 = vld [vmem:[#allocation2 + $0xd0] sm:$0xff]  ;;  %v316_v32 = vld [vmem:[#allocation2 + $0x98] sm:$0xff] }
  0x45   :  { %v532_v35 = vadd.f32 %v531_v28, %v444_v19  ;;  %v307_v19 = vld [vmem:[#allocation2 + $0x50] sm:$0xff]  ;;  %v3111_v23 = vld [vmem:[#allocation5 + $0x108] sm:$0xff]   ;;  %v300_v28 = vld [vmem:[#allocation2 + $0x18] sm:$0xff] }
  0x46   :  { %2730 = vmatpush3.bf16.msra.mxu0 %v3103_v30  ;;  %v459_v30 = vunpack.c.l.bf16 %v346_v13  ;;  %v509_v40 = vrot.slane %v508_v33, 4  ;;  %v3109_v13 = vld [vmem:[#allocation5 + $0x148] sm:$0xff]   ;;  %v382_v22 = vunpack.c.h.bf16 %v307_v19  ;;  %v3113_v26 = vld [vmem:[#allocation5 + $0x150] sm:$0xff]  }
  0x47   :  { %2752 = vmatpush3.bf16.msra.mxu1 %v3104_v31  ;;  %2759 = vmatprep.subr.bf16.mxu0 %v3105_v54  ;;  %v492_v31 = vadd.f32 %v491_v24, %v425_v12  ;;  %v533_v41 = vadd.f32 %v532_v35, %v460_v27  ;;  %v3108_v12 = vld [vmem:[#allocation5 + $0x180] sm:$0xff]   ;;  %v3112_v24 = vld [vmem:[#allocation5 + $0x188] sm:$0xff]   ;;  %v398_v27 = vunpack.c.h.bf16 %v3450_v20  ;;  %v3457_v35 = vld [vmem:[#allocation2 + $0x150] sm:$0xff] }
  0x48   :  { %2781 = vmatprep.subr.bf16.mxu1 %v3106_v58  ;;  %v520_v43 = vadd.f32 %v519_v39, %v459_v30  ;;  %v510_v44 = vadd.f32 %v509_v40, %v508_v33  ;;  %v3114_v30 = vld [vmem:[#allocation5 + $0x1d0] sm:$0xff]   ;;  %v368_v39 = vunpack.c.h.bf16 %v300_v28  ;;  %v3117_v40 = vld [vmem:[#allocation5 + $0x158] sm:$0xff]  }
  0x49   :  { %v493_v38 = vadd.f32 %v492_v31, %v441_v21  ;;  %v534_v45 = vadd.f32 %v533_v41, %v476_v34  ;;  %v366_v21 = vunpack.c.h.bf16 %v299_v18  ;;  %v3455_v31 = vld [vmem:[#allocation2 + $0x110] sm:$0xff]  ;;  %v3118_v41 = vld [vmem:[#allocation5 + $0x1d8] sm:$0xff]  }
  0x4a   :  { %v521_v47 = vadd.f32 %v520_v43, %v475_v37  ;;  %v511_v48 = vrot.slane %v510_v44, 2  ;;  %v3115_v33 = vld [vmem:[#allocation5 + $0x110] sm:$0xff]   ;;  %v414_v37 = vunpack.c.h.bf16 %v3452_v25  ;;  %v324_v43 = vld [vmem:[#allocation2 + $0xd8] sm:$0xff] }
  0x4b   :  { %v494_v42 = vadd.f32 %v493_v38, %v457_v29  ;;  %v535_v49 = vrot.slane %v534_v45, 4  ;;  %v308_v29 = vld [vmem:[#allocation2 + $0x58] sm:$0xff]  ;;  %v3116_v34 = vld [vmem:[#allocation5 + $0x190] sm:$0xff]   ;;  %v554_v38 = vadd.f32 %v382_v22, %v366_v21 }
  0x4c   :  { %v522_v51 = vrot.slane %v521_v47, 4  ;;  %v512_v52 = vadd.f32 %v511_v48, %v510_v44  ;;  %v367_v44 = vunpack.c.l.bf16 %v300_v28  ;;  %v430_v48 = vunpack.c.h.bf16 %v3455_v31  ;;  %v3126_v28 = vld [vmem:[#allocation5 + $0x1e8] sm:$0xff]  }
  0x4d   :  { %v495_v46 = vadd.f32 %v494_v42, %v473_v36  ;;  %v536_v53 = vadd.f32 %v535_v49, %v534_v45  ;;  %v365_v36 = vunpack.c.l.bf16 %v299_v18  ;;  %v381_v42 = vunpack.c.l.bf16 %v307_v19 }
  0x4e   :  { %v523_v55 = vadd.f32 %v522_v51, %v521_v47  ;;  %v513_v56 = vrot.slane %v512_v52, 1  ;;  %v383_v45 = vunpack.c.l.bf16 %v308_v29  ;;  %v3460_v47 = vld [vmem:[#allocation2 + $0x190] sm:$0xff]  ;;  %v555_v49 = vadd.f32 %v554_v38, %v398_v27 }
  0x4f   :  { %v496_v50 = vrot.slane %v495_v46, 4  ;;  %v537_v57 = vrot.slane %v536_v53, 2  ;;  %v397_v51 = vunpack.c.l.bf16 %v3450_v20  ;;  %v445_v19 = vunpack.c.l.bf16 %v3457_v35  ;;  %v356_v20 = vld [vmem:[#allocation2 + $0x1d8] sm:$0xff] }
  0x50   :  { %v524_v59 = vrot.slane %v523_v55, 2  ;;  %v514_v60 = vadd.f32 %v513_v56, %v512_v52  ;;  %v332_v52 = vld [vmem:[#allocation2 + $0x118] sm:$0xff]  ;;  %v3464_v56 = vld [vmem:[#allocation2 + $0x1d0] sm:$0xff] }
  0x51   :  { %v497_v54 = vadd.f32 %v496_v50, %v495_v46  ;;  %v538_v61 = vadd.f32 %v537_v57, %v536_v53  ;;  %v384_v46 = vunpack.c.h.bf16 %v308_v29  ;;  %v400_v50 = vunpack.c.h.bf16 %v316_v32 }
  0x52   :  { %v525_v63 = vadd.f32 %v524_v59, %v523_v55  ;;  %v698_v0 = vmul.f32 0.015625, %v514_v60  ;;  %v399_v53 = vunpack.c.l.bf16 %v316_v32  ;;  %v3120_v55 = vld [vmem:[#allocation5 + $0x198] sm:$0xff]   ;;  %v446_v57 = vunpack.c.h.bf16 %v3457_v35 }
  0x53   :  { %v498_v58 = vrot.slane %v497_v54, 2  ;;  %v539_v1 = vrot.slane %v538_v61, 1  ;;  %v416_v59 = vunpack.c.h.bf16 %v324_v43  ;;  %v580_v60 = vadd.f32 %v384_v46, %v368_v39 }
  0x54   :  { %v526_v3 = vrot.slane %v525_v63, 1  ;;  %v714_v4 = vpack.c.bf16 %v698_v0, %v698_v0  ;;  %v415_v0 = vunpack.c.l.bf16 %v324_v43  ;;  %v461_v29 = vunpack.c.l.bf16 %v3460_v47 }
  0x55   :  { %v499_v62 = vadd.f32 %v498_v58, %v497_v54  ;;  %v540_v5 = vadd.f32 %v539_v1, %v538_v61  ;;  %v3119_v54 = vld [vmem:[#allocation5 + $0x118] sm:$0xff]   ;;  %v556_v58 = vadd.f32 %v555_v49, %v414_v37  ;;  %v3121_v61 = vld [vmem:[#allocation5 + $0x160] sm:$0xff]   ;;  %v541_v1 = vadd.f32 %v381_v42, %v365_v36  ;;  %v3128_v37 = vld [vmem:[#allocation5 + $0x1a8] sm:$0xff]  }
  0x56   :  { %v527_v7 = vadd.f32 %v526_v3, %v525_v63  ;;  %1529 = vmatprep.mubr.bf16.mxu0 %v714_v4  ;;  %v340_v63 = vld [vmem:[#allocation2 + $0x158] sm:$0xff]  ;;  %v3122_v3 = vld [vmem:[#allocation5 + $0x1e0] sm:$0xff]   ;;  %v462_v4 = vunpack.c.h.bf16 %v3460_v47  ;;  %v480_v35 = vunpack.c.h.bf16 %v356_v20  ;;  %v477_v38 = vunpack.c.l.bf16 %v3464_v56  ;;  %v3129_v42 = vld [vmem:[#allocation5 + $0x170] sm:$0xff]  }
  0x57   :  { %v500_v2 = vrot.slane %v499_v62, 1  ;;  %v700_v8 = vmul.f32 0.015625, %v540_v5  ;;  %v557_v5 = vadd.f32 %v556_v58, %v430_v48  ;;  %v447_v21 = vunpack.c.l.bf16 %v340_v63  ;;  %v3131_v48 = vld [vmem:[#allocation5 + $0x130] sm:$0xff]  }
  0x58   :  { %v699_v11 = vmul.f32 0.015625, %v527_v7  ;;  %v581_v7 = vadd.f32 %v580_v60, %v400_v50  ;;  %v479_v39 = vunpack.c.l.bf16 %v356_v20  ;;  %v3135_v60 = vld [vmem:[#allocation5 + $0x138] sm:$0xff]  }
  0x59   :  { %v501_v6 = vadd.f32 %v500_v2, %v499_v62  ;;  %v716_v14 = vpack.c.bf16 %v700_v8, %v700_v8  ;;  %v413_v62 = vunpack.c.l.bf16 %v3452_v25  ;;  %v567_v2 = vadd.f32 %v383_v45, %v367_v44  ;;  %v3130_v45 = vld [vmem:[#allocation5 + $0x1f0] sm:$0xff]  }
  0x5a   :  { %v715_v16 = vpack.c.bf16 %v699_v11, %v699_v11  ;;  %v429_v8 = vunpack.c.l.bf16 %v3455_v31  ;;  %v542_v11 = vadd.f32 %v541_v1, %v397_v51  ;;  %v582_v18 = vadd.f32 %v581_v7, %v416_v59  ;;  %v3132_v51 = vld [vmem:[#allocation5 + $0x1b0] sm:$0xff]   ;;  %v3138_v7 = vld [vmem:[#allocation5 + $0x2c0] sm:$0xff]  }
  0x5b   :  { %v697_v10 = vmul.f32 0.015625, %v501_v6  ;;  %1569 = vmatprep.mubr.bf16.mxu1 %v716_v14  ;;  %v432_v6 = vunpack.c.h.bf16 %v332_v52  ;;  %v3124_v14 = vld [vmem:[#allocation5 + $0x1a0] sm:$0xff]  }
  0x5c   :  { %1570 = vmatmul.mubr.bf16.vlgmr.msra.gmra.mrb[0].mxu1 %v715_v16  ;;  %v558_v16 = vadd.f32 %v557_v5, %v446_v57  ;;  %v543_v22 = vadd.f32 %v542_v11, %v413_v62 }
  0x5d   :  { %v713_v15 = vpack.c.bf16 %v697_v10, %v697_v10  ;;  %2782 = vmatpush3.bf16.msra.mxu1 %v3108_v12  ;;  %v431_v10 = vunpack.c.l.bf16 %v332_v52  ;;  %v568_v12 = vadd.f32 %v567_v2, %v399_v53  ;;  %v583_v27 = vadd.f32 %v582_v18, %v432_v6  ;;  %v3137_v6 = vld [vmem:[#allocation5 + $0x240] sm:$0xff]  }
  0x5e   :  { %2783 = vmatprep.subr.bf16.mxu1 %v3110_v17  ;;  %v448_v17 = vunpack.c.h.bf16 %v340_v63  ;;  %v559_v25 = vadd.f32 %v558_v16, %v462_v4  ;;  %v544_v31 = vadd.f32 %v543_v22, %v429_v8  ;;  %v3136_v63 = vld [vmem:[#allocation5 + $0x1b8] sm:$0xff]  }
  0x5f   :  { %1530 = vmatmul.mubr.bf16.vlgmr.msra.gmra.mrb[0].mxu0 %v713_v15  ;;  %v478_v15 = vunpack.c.h.bf16 %v3464_v56 }
  0x60   :  { %2760 = vmatpush3.bf16.msra.mxu0 %v3107_v9  ;;  %v348_v9 = vld [vmem:[#allocation2 + $0x198] sm:$0xff]  ;;  %v584_v36 = vadd.f32 %v583_v27, %v448_v17 }
  0x61   :  { %2761 = vmatprep.subr.bf16.mxu0 %v3109_v13  ;;  %2784 = vmatpush3.bf16.msra.mxu1 %v3112_v24  ;;  %v3123_v13 = vld [vmem:[#allocation5 + $0x120] sm:$0xff]   ;;  %v3125_v24 = vld [vmem:[#allocation5 + $0x168] sm:$0xff]  }
  0x62   :  { %2785 = vmatprep.subr.bf16.mxu1 %v3114_v30  ;;  %v463_v30 = vunpack.c.l.bf16 %v348_v9 }
  0x64   :  { %2762 = vmatpush3.bf16.msra.mxu0 %v3111_v23  ;;  %v569_v23 = vadd.f32 %v568_v12, %v415_v0 }
  0x65   :  { %2763 = vmatprep.subr.bf16.mxu0 %v3113_v26  ;;  %2786 = vmatpush3.bf16.msra.mxu1 %v3116_v34  ;;  %v464_v26 = vunpack.c.h.bf16 %v348_v9  ;;  %v560_v34 = vadd.f32 %v559_v25, %v478_v15  ;;  %v3141_v25 = vld [vmem:[#allocation5 + $0x248] sm:$0xff]  }
  0x66   :  { %2787 = vmatprep.subr.bf16.mxu1 %v3118_v41  ;;  %v570_v32 = vadd.f32 %v569_v23, %v431_v10 }
  0x67   :  { %v561_v43 = vrot.slane %v560_v34, 4  ;;  %v585_v44 = vadd.f32 %v584_v36, %v464_v26 }
  0x68   :  { %2764 = vmatpush3.bf16.msra.mxu0 %v3115_v33  ;;  %v3127_v33 = vld [vmem:[#allocation5 + $0x128] sm:$0xff]   ;;  %v571_v41 = vadd.f32 %v570_v32, %v447_v21  ;;  %v3139_v21 = vld [vmem:[#allocation5 + $0x200] sm:$0xff]  }
  0x69   :  { %2765 = vmatprep.subr.bf16.mxu0 %v3117_v40  ;;  %2788 = vmatpush3.bf16.msra.mxu1 %v3120_v55  ;;  %v545_v40 = vadd.f32 %v544_v31, %v445_v19  ;;  %v562_v49 = vadd.f32 %v561_v43, %v560_v34  ;;  %v586_v50 = vadd.f32 %v585_v44, %v480_v35  ;;  %v3134_v55 = vld [vmem:[#allocation5 + $0x1f8] sm:$0xff]   ;;  %v309_v31 = vld [vmem:[#allocation2 + $0x60] sm:$0xff]  ;;  %v3143_v34 = vld [vmem:[#allocation5 + $0x208] sm:$0xff]  }
  0x6a   :  { %2789 = vmatprep.subr.bf16.mxu1 %v3122_v3  ;;  %v572_v47 = vadd.f32 %v571_v41, %v463_v30  ;;  %v301_v30 = vld [vmem:[#allocation2 + $0x20] sm:$0xff]  ;;  %v386_v36 = vunpack.c.h.bf16 %v309_v31  ;;  %v3145_v41 = vld [vmem:[#allocation5 + $0x250] sm:$0xff]  }
  0x6b   :  { %v546_v46 = vadd.f32 %v545_v40, %v461_v29  ;;  %v563_v56 = vrot.slane %v562_v49, 2  ;;  %v587_v57 = vrot.slane %v586_v50, 4  ;;  %v3142_v29 = vld [vmem:[#allocation5 + $0x2c8] sm:$0xff]   ;;  %v3474_v32 = vld [vmem:[#allocation2 + $0xa0] sm:$0xff]  ;;  %v3147_v44 = vld [vmem:[#allocation5 + $0x210] sm:$0xff]  }
  0x6c   :  { %2766 = vmatpush3.bf16.msra.mxu0 %v3119_v54  ;;  %v573_v53 = vadd.f32 %v572_v47, %v479_v39  ;;  %v3133_v54 = vld [vmem:[#allocation5 + $0x178] sm:$0xff]   ;;  %v3476_v35 = vld [vmem:[#allocation2 + $0xe0] sm:$0xff]  ;;  %v302_v39 = vld [vmem:[#allocation2 + $0x28] sm:$0xff]  ;;  %v369_v47 = vunpack.c.l.bf16 %v301_v30 }
  0x6d   :  { %2767 = vmatprep.subr.bf16.mxu0 %v3121_v61  ;;  %2790 = vmatpush3.bf16.msra.mxu1 %v3124_v14  ;;  %v547_v52 = vadd.f32 %v546_v46, %v477_v38  ;;  %v564_v61 = vadd.f32 %v563_v56, %v562_v49  ;;  %v588_v62 = vadd.f32 %v587_v57, %v586_v50  ;;  %v402_v38 = vunpack.c.h.bf16 %v3474_v32  ;;  %v310_v40 = vld [vmem:[#allocation2 + $0x68] sm:$0xff]  ;;  %v3479_v43 = vld [vmem:[#allocation2 + $0x120] sm:$0xff] }
  0x6e   :  { %2791 = vmatprep.subr.bf16.mxu1 %v3126_v28  ;;  %v574_v59 = vrot.slane %v573_v53, 4  ;;  %v3481_v46 = vld [vmem:[#allocation2 + $0x160] sm:$0xff]  ;;  %v418_v49 = vunpack.c.h.bf16 %v3476_v35  ;;  %v372_v56 = vunpack.c.h.bf16 %v302_v39  ;;  %v387_v57 = vunpack.c.l.bf16 %v310_v40 }
  0x6f   :  { %v548_v58 = vrot.slane %v547_v52, 4  ;;  %v565_v2 = vrot.slane %v564_v61, 1  ;;  %v589_v3 = vrot.slane %v588_v62, 2 }
  0x70   :  { %2768 = vmatpush3.bf16.msra.mxu0 %v3123_v13  ;;  %v575_v1 = vadd.f32 %v574_v59, %v573_v53  ;;  %v3150_v53 = vld [vmem:[#allocation5 + $0x2d8] sm:$0xff]   ;;  %v3484_v59 = vld [vmem:[#allocation2 + $0x1a0] sm:$0xff] }
  0x71   :  { %2769 = vmatprep.subr.bf16.mxu0 %v3125_v24  ;;  %2792 = vmatpush3.bf16.msra.mxu1 %v3128_v37  ;;  %v549_v0 = vadd.f32 %v548_v58, %v547_v52  ;;  %v566_v8 = vadd.f32 %v565_v2, %v564_v61  ;;  %v590_v9 = vadd.f32 %v589_v3, %v588_v62  ;;  %v3140_v24 = vld [vmem:[#allocation5 + $0x280] sm:$0xff]   ;;  %v3144_v37 = vld [vmem:[#allocation5 + $0x288] sm:$0xff]   ;;  %v3149_v52 = vld [vmem:[#allocation5 + $0x258] sm:$0xff]   ;;  %v388_v58 = vunpack.c.h.bf16 %v310_v40 }
  0x72   :  { %2793 = vmatprep.subr.bf16.mxu1 %v3130_v45  ;;  %v576_v5 = vrot.slane %v575_v1, 2  ;;  %v3148_v45 = vld [vmem:[#allocation5 + $0x290] sm:$0xff]   ;;  %v401_v62 = vunpack.c.l.bf16 %v3474_v32  ;;  %v3151_v2 = vld [vmem:[#allocation5 + $0x218] sm:$0xff]   ;;  %v3158_v40 = vld [vmem:[#allocation5 + $0x2e8] sm:$0xff]  }
  0x73   :  { %v550_v4 = vrot.slane %v549_v0, 2  ;;  %v702_v12 = vmul.f32 0.015625, %v566_v8  ;;  %v591_v13 = vrot.slane %v590_v9, 1  ;;  %v3152_v3 = vld [vmem:[#allocation5 + $0x298] sm:$0xff]  }
  0x74   :  { %2770 = vmatpush3.bf16.msra.mxu0 %v3127_v33  ;;  %v577_v11 = vadd.f32 %v576_v5, %v575_v1  ;;  %v370_v33 = vunpack.c.h.bf16 %v301_v30  ;;  %v417_v5 = vunpack.c.l.bf16 %v3476_v35 }
  0x75   :  { %2771 = vmatprep.subr.bf16.mxu0 %v3129_v42  ;;  %2794 = vmatpush3.bf16.msra.mxu1 %v3132_v51  ;;  %v551_v10 = vadd.f32 %v550_v4, %v549_v0  ;;  %v718_v16 = vpack.c.bf16 %v702_v12, %v702_v12  ;;  %v592_v17 = vadd.f32 %v591_v13, %v590_v9  ;;  %v3146_v42 = vld [vmem:[#allocation5 + $0x2d0] sm:$0xff]   ;;  %v318_v51 = vld [vmem:[#allocation2 + $0xa8] sm:$0xff]  ;;  %v3488_v4 = vld [vmem:[#allocation2 + $0x1e0] sm:$0xff] }
  0x76   :  { %2795 = vmatprep.subr.bf16.mxu1 %v3134_v55  ;;  %v578_v15 = vrot.slane %v577_v11, 1  ;;  %v606_v50 = vadd.f32 %v386_v36, %v370_v33  ;;  %v371_v55 = vunpack.c.l.bf16 %v302_v39  ;;  %v403_v0 = vunpack.c.l.bf16 %v318_v51  ;;  %v3153_v9 = vld [vmem:[#allocation5 + $0x260] sm:$0xff]   ;;  %v3157_v36 = vld [vmem:[#allocation5 + $0x268] sm:$0xff]  }
  0x77   :  { %v552_v14 = vrot.slane %v551_v10, 1  ;;  %1609 = vmatprep.mubr.bf16.mxu0 %v718_v16  ;;  %v704_v20 = vmul.f32 0.015625, %v592_v17  ;;  %v404_v1 = vunpack.c.h.bf16 %v318_v51  ;;  %v632_v12 = vadd.f32 %v388_v58, %v372_v56  ;;  %v3162_v56 = vld [vmem:[#allocation5 + $0x2f0] sm:$0xff]  }
  0x78   :  { %2772 = vmatpush3.bf16.msra.mxu0 %v3131_v48  ;;  %v579_v19 = vadd.f32 %v578_v15, %v577_v11  ;;  %v385_v48 = vunpack.c.l.bf16 %v309_v31  ;;  %v607_v61 = vadd.f32 %v606_v50, %v402_v38  ;;  %v3154_v15 = vld [vmem:[#allocation5 + $0x2e0] sm:$0xff]   ;;  %v433_v16 = vunpack.c.l.bf16 %v3479_v43  ;;  %v358_v31 = vld [vmem:[#allocation2 + $0x1e8] sm:$0xff] }
  0x79   :  { %2773 = vmatprep.subr.bf16.mxu0 %v3133_v54  ;;  %2796 = vmatpush3.bf16.msra.mxu1 %v3136_v63  ;;  %v553_v18 = vadd.f32 %v552_v14, %v551_v10  ;;  %v720_v26 = vpack.c.bf16 %v704_v20, %v704_v20  ;;  %v326_v54 = vld [vmem:[#allocation2 + $0xe8] sm:$0xff]  ;;  %v619_v14 = vadd.f32 %v387_v57, %v371_v55  ;;  %v466_v17 = vunpack.c.h.bf16 %v3484_v59 }
  0x7a   :  { %2825 = vmatprep.subr.bf16.mxu1 %v3138_v7  ;;  %v703_v23 = vmul.f32 0.015625, %v579_v19  ;;  %v334_v63 = vld [vmem:[#allocation2 + $0x128] sm:$0xff]  ;;  %v608_v7 = vadd.f32 %v607_v61, %v418_v49  ;;  %v419_v8 = vunpack.c.l.bf16 %v326_v54  ;;  %v420_v11 = vunpack.c.h.bf16 %v326_v54  ;;  %v3161_v54 = vld [vmem:[#allocation5 + $0x270] sm:$0xff]  }
  0x7b   :  { %v701_v22 = vmul.f32 0.015625, %v553_v18  ;;  %1649 = vmatprep.mubr.bf16.mxu1 %v720_v26  ;;  %v342_v10 = vld [vmem:[#allocation2 + $0x168] sm:$0xff]  ;;  %v593_v13 = vadd.f32 %v385_v48, %v369_v47  ;;  %v435_v19 = vunpack.c.l.bf16 %v334_v63  ;;  %v3156_v26 = vld [vmem:[#allocation5 + $0x2a0] sm:$0xff]   ;;  %v483_v48 = vunpack.c.l.bf16 %v358_v31 }
  0x7c   :  { %2774 = vmatpush3.bf16.msra.mxu0 %v3135_v60  ;;  %v719_v28 = vpack.c.bf16 %v703_v23, %v703_v23  ;;  %v434_v60 = vunpack.c.h.bf16 %v3479_v43  ;;  %v350_v20 = vld [vmem:[#allocation2 + $0x1a8] sm:$0xff]  ;;  %v451_v30 = vunpack.c.l.bf16 %v342_v10  ;;  %v452_v32 = vunpack.c.h.bf16 %v342_v10  ;;  %v3168_v10 = vld [vmem:[#allocation5 + $0x2b8] sm:$0xff]  }
  0x7d   :  { %2803 = vmatprep.subr.bf16.mxu0 %v3137_v6  ;;  %v717_v27 = vpack.c.bf16 %v701_v22, %v701_v22  ;;  %v450_v6 = vunpack.c.h.bf16 %v3481_v46  ;;  %v633_v22 = vadd.f32 %v632_v12, %v404_v1  ;;  %v594_v23 = vadd.f32 %v593_v13, %v401_v62  ;;  %v3160_v49 = vld [vmem:[#allocation5 + $0x2a8] sm:$0xff]   ;;  %v3164_v62 = vld [vmem:[#allocation5 + $0x2b0] sm:$0xff]  }
  0x7e   :  { %1650 = vmatmul.mubr.bf16.vlgmr.msra.gmra.mrb[4].mxu1 %v719_v28  ;;  %v609_v18 = vadd.f32 %v608_v7, %v434_v60  ;;  %v482_v28 = vunpack.c.h.bf16 %v3488_v4  ;;  %v467_v39 = vunpack.c.l.bf16 %v350_v20  ;;  %v484_v50 = vunpack.c.h.bf16 %v358_v31  ;;  %v3163_v60 = vld [vmem:[#allocation5 + $0x230] sm:$0xff]  }
  0x7f   :  { %1610 = vmatmul.mubr.bf16.vlgmr.msra.gmra.mrb[4].mxu0 %v717_v27  ;;  %2826 = vmatpush3.bf16.msra.mxu1 %v3140_v24  ;;  %v620_v24 = vadd.f32 %v619_v14, %v403_v0  ;;  %v449_v27 = vunpack.c.l.bf16 %v3481_v46  ;;  %v634_v33 = vadd.f32 %v633_v22, %v420_v11  ;;  %v481_v46 = vunpack.c.l.bf16 %v3488_v4  ;;  %v3166_v4 = vld [vmem:[#allocation5 + $0x2f8] sm:$0xff]  }
  0x80   :  { %2804 = vmatpush3.bf16.msra.mxu0 %v3139_v21  ;;  %2827 = vmatprep.subr.bf16.mxu1 %v3142_v29  ;;  %v436_v21 = vunpack.c.h.bf16 %v334_v63  ;;  %v610_v29 = vadd.f32 %v609_v18, %v450_v6 }
  0x81   :  { %2805 = vmatprep.subr.bf16.mxu0 %v3141_v25  ;;  %v3155_v25 = vld [vmem:[#allocation5 + $0x220] sm:$0xff]   ;;  %v621_v35 = vadd.f32 %v620_v24, %v419_v8  ;;  %v3167_v8 = vld [vmem:[#allocation5 + $0x238] sm:$0xff]  }
  0x82   :  { %v611_v38 = vadd.f32 %v610_v29, %v466_v17 }
  0x83   :  { %2828 = vmatpush3.bf16.msra.mxu1 %v3144_v37  ;;  %v465_v37 = vunpack.c.l.bf16 %v3484_v59 }
  0x84   :  { %2806 = vmatpush3.bf16.msra.mxu0 %v3143_v34  ;;  %2829 = vmatprep.subr.bf16.mxu1 %v3146_v42  ;;  %v595_v34 = vadd.f32 %v594_v23, %v417_v5  ;;  %v635_v42 = vadd.f32 %v634_v33, %v436_v21  ;;  %v612_v47 = vadd.f32 %v611_v38, %v482_v28 }
  0x85   :  { %2807 = vmatprep.subr.bf16.mxu0 %v3145_v41  ;;  %v468_v41 = vunpack.c.h.bf16 %v350_v20 }
  0x86   :  { %v596_v43 = vadd.f32 %v595_v34, %v433_v16  ;;  %v636_v51 = vadd.f32 %v635_v42, %v452_v32  ;;  %v613_v55 = vrot.slane %v612_v47, 4  ;;  %v3171_v32 = vld [vmem:[#allocation5 + $0x300] sm:$0xff]   ;;  %v3175_v42 = vld [vmem:[#allocation5 + $0x308] sm:$0xff]  }
  0x87   :  { %2830 = vmatpush3.bf16.msra.mxu1 %v3148_v45  ;;  %v3159_v45 = vld [vmem:[#allocation5 + $0x228] sm:$0xff]  }
  0x88   :  { %2808 = vmatpush3.bf16.msra.mxu0 %v3147_v44  ;;  %2831 = vmatprep.subr.bf16.mxu1 %v3150_v53  ;;  %v622_v44 = vadd.f32 %v621_v35, %v435_v19  ;;  %v637_v57 = vadd.f32 %v636_v51, %v468_v41  ;;  %v614_v61 = vadd.f32 %v613_v55, %v612_v47  ;;  %v3170_v19 = vld [vmem:[#allocation5 + $0x3c0] sm:$0xff]   ;;  %v3174_v41 = vld [vmem:[#allocation5 + $0x3c8] sm:$0xff]   ;;  %v3502_v47 = vld [vmem:[#allocation2 + $0xb0] sm:$0xff] }
  0x89   :  { %2809 = vmatprep.subr.bf16.mxu0 %v3149_v52  ;;  %v597_v52 = vadd.f32 %v596_v43, %v449_v27  ;;  %v3498_v43 = vld [vmem:[#allocation2 + $0x30] sm:$0xff] }
  0x8a   :  { %v623_v53 = vadd.f32 %v622_v44, %v451_v30  ;;  %v638_v63 = vadd.f32 %v637_v57, %v484_v50  ;;  %v3500_v44 = vld [vmem:[#allocation2 + $0x70] sm:$0xff]  ;;  %v374_v50 = vunpack.c.h.bf16 %v3498_v43  ;;  %v373_v55 = vunpack.c.l.bf16 %v3498_v43  ;;  %v3554_v43 = vld [vmem:[#allocation2 + $0x280] sm:$0xff] }
  0x8b   :  { %2832 = vmatpush3.bf16.msra.mxu1 %v3152_v3  ;;  %v598_v58 = vadd.f32 %v597_v52, %v465_v37  ;;  %v615_v3 = vrot.slane %v614_v61, 2  ;;  %v3173_v37 = vld [vmem:[#allocation5 + $0x348] sm:$0xff]   ;;  %v390_v51 = vunpack.c.h.bf16 %v3500_v44  ;;  %v3510_v52 = vld [vmem:[#allocation2 + $0x170] sm:$0xff]  ;;  %v405_v57 = vunpack.c.l.bf16 %v3502_v47 }
  0x8c   :  { %2810 = vmatpush3.bf16.msra.mxu0 %v3151_v2  ;;  %2833 = vmatprep.subr.bf16.mxu1 %v3154_v15  ;;  %v624_v59 = vadd.f32 %v623_v53, %v467_v39  ;;  %v3165_v2 = vld [vmem:[#allocation5 + $0x278] sm:$0xff]   ;;  %v639_v5 = vrot.slane %v638_v63, 4  ;;  %v3169_v15 = vld [vmem:[#allocation5 + $0x340] sm:$0xff]   ;;  %v3512_v53 = vld [vmem:[#allocation2 + $0x1b0] sm:$0xff] }
  0x8d   :  { %2811 = vmatprep.subr.bf16.mxu0 %v3153_v9  ;;  %v599_v0 = vadd.f32 %v598_v58, %v481_v46  ;;  %v616_v9 = vadd.f32 %v615_v3, %v614_v61  ;;  %v3177_v46 = vld [vmem:[#allocation5 + $0x350] sm:$0xff]   ;;  %v406_v58 = vunpack.c.h.bf16 %v3502_v47  ;;  %v453_v3 = vunpack.c.l.bf16 %v3510_v52 }
  0x8e   :  { %v625_v1 = vadd.f32 %v624_v59, %v483_v48  ;;  %v640_v11 = vadd.f32 %v639_v5, %v638_v63  ;;  %v3504_v48 = vld [vmem:[#allocation2 + $0xf0] sm:$0xff]  ;;  %v304_v63 = vld [vmem:[#allocation2 + $0x38] sm:$0xff]  ;;  %v469_v5 = vunpack.c.l.bf16 %v3512_v53 }
  0x8f   :  { %2834 = vmatpush3.bf16.msra.mxu1 %v3156_v26  ;;  %v600_v6 = vrot.slane %v599_v0, 4  ;;  %v617_v14 = vrot.slane %v616_v9, 1  ;;  %v421_v59 = vunpack.c.l.bf16 %v3504_v48 }
  0x90   :  { %2812 = vmatpush3.bf16.msra.mxu0 %v3155_v25  ;;  %2835 = vmatprep.subr.bf16.mxu1 %v3158_v40  ;;  %v626_v7 = vrot.slane %v625_v1, 4  ;;  %v641_v16 = vrot.slane %v640_v11, 2 }
  0x91   :  { %2813 = vmatprep.subr.bf16.mxu0 %v3157_v36  ;;  %v601_v12 = vadd.f32 %v600_v6, %v599_v0  ;;  %v618_v20 = vadd.f32 %v617_v14, %v616_v9  ;;  %v3172_v36 = vld [vmem:[#allocation5 + $0x380] sm:$0xff]   ;;  %v312_v0 = vld [vmem:[#allocation2 + $0x78] sm:$0xff]  ;;  %v470_v6 = vunpack.c.h.bf16 %v3512_v53  ;;  %v3179_v14 = vld [vmem:[#allocation5 + $0x310] sm:$0xff]  }
  0x92   :  { %v627_v13 = vadd.f32 %v626_v7, %v625_v1  ;;  %v642_v21 = vadd.f32 %v641_v16, %v640_v11  ;;  %v320_v1 = vld [vmem:[#allocation2 + $0xb8] sm:$0xff]  ;;  %v375_v16 = vunpack.c.l.bf16 %v304_v63 }
  0x93   :  { %2836 = vmatpush3.bf16.msra.mxu1 %v3160_v49  ;;  %v602_v17 = vrot.slane %v601_v12, 2  ;;  %v706_v24 = vmul.f32 0.015625, %v618_v20  ;;  %v3506_v49 = vld [vmem:[#allocation2 + $0x130] sm:$0xff]  ;;  %v3528_v7 = vld [vmem:[#allocation2 + $0xf8] sm:$0xff] }
  0x94   :  { %2814 = vmatpush3.bf16.msra.mxu0 %v3159_v45  ;;  %2837 = vmatprep.subr.bf16.mxu1 %v3162_v56  ;;  %v628_v18 = vrot.slane %v627_v13, 2  ;;  %v643_v25 = vrot.slane %v642_v21, 1  ;;  %v3176_v45 = vld [vmem:[#allocation5 + $0x388] sm:$0xff]   ;;  %v389_v56 = vunpack.c.l.bf16 %v3500_v44  ;;  %v437_v61 = vunpack.c.l.bf16 %v3506_v49  ;;  %v3532_v11 = vld [vmem:[#allocation2 + $0x138] sm:$0xff]  ;;  %v3180_v20 = vld [vmem:[#allocation5 + $0x390] sm:$0xff]  }
  0x95   :  { %2815 = vmatprep.subr.bf16.mxu0 %v3161_v54  ;;  %v603_v22 = vadd.f32 %v602_v17, %v601_v12  ;;  %v722_v28 = vpack.c.bf16 %v706_v24, %v706_v24  ;;  %v3514_v54 = vld [vmem:[#allocation2 + $0x1f0] sm:$0xff]  ;;  %v3534_v12 = vld [vmem:[#allocation2 + $0x178] sm:$0xff]  ;;  %v391_v17 = vunpack.c.l.bf16 %v312_v0  ;;  %v408_v24 = vunpack.c.h.bf16 %v320_v1 }
  0x96   :  { %v629_v23 = vadd.f32 %v628_v18, %v627_v13  ;;  %v644_v29 = vadd.f32 %v643_v25, %v642_v21  ;;  %v486_v9 = vunpack.c.h.bf16 %v3514_v54  ;;  %v376_v13 = vunpack.c.h.bf16 %v304_v63  ;;  %v3181_v21 = vld [vmem:[#allocation5 + $0x358] sm:$0xff]   ;;  %v3186_v63 = vld [vmem:[#allocation5 + $0x3e0] sm:$0xff]  }
  0x97   :  { %2838 = vmatpush3.bf16.msra.mxu1 %v3164_v62  ;;  %v604_v26 = vrot.slane %v603_v22, 1  ;;  %1689 = vmatprep.mubr.bf16.mxu0 %v722_v28  ;;  %v438_v62 = vunpack.c.h.bf16 %v3506_v49  ;;  %v392_v18 = vunpack.c.h.bf16 %v312_v0  ;;  %v423_v25 = vunpack.c.l.bf16 %v3528_v7  ;;  %v3184_v44 = vld [vmem:[#allocation5 + $0x398] sm:$0xff]   ;;  %v3562_v0 = vld [vmem:[#allocation2 + $0x300] sm:$0xff] }
  0x98   :  { %2816 = vmatpush3.bf16.msra.mxu0 %v3163_v60  ;;  %2839 = vmatprep.subr.bf16.mxu1 %v3166_v4  ;;  %v630_v27 = vrot.slane %v629_v23, 1  ;;  %v708_v33 = vmul.f32 0.015625, %v644_v29  ;;  %v422_v60 = vunpack.c.h.bf16 %v3504_v48  ;;  %v454_v4 = vunpack.c.h.bf16 %v3510_v52  ;;  %v3602_v52 = vld [vmem:[#allocation2 + $0x288] sm:$0xff] }
  0x99   :  { %2817 = vmatprep.subr.bf16.mxu0 %v3165_v2  ;;  %v605_v30 = vadd.f32 %v604_v26, %v603_v22  ;;  %v3178_v2 = vld [vmem:[#allocation5 + $0x3d0] sm:$0xff]   ;;  %v424_v26 = vunpack.c.h.bf16 %v3528_v7  ;;  %v439_v28 = vunpack.c.l.bf16 %v3532_v11  ;;  %v440_v29 = vunpack.c.h.bf16 %v3532_v11 }
  0x9a   :  { %v631_v31 = vadd.f32 %v630_v27, %v629_v23  ;;  %v724_v38 = vpack.c.bf16 %v708_v33, %v708_v33  ;;  %v3538_v23 = vld [vmem:[#allocation2 + $0x1f8] sm:$0xff]  ;;  %v1914_v11 = vunpack.c.l.bf16 %v3554_v43  ;;  %v1946_v48 = vunpack.c.l.bf16 %v3562_v0 }
  0x9b   :  { %2840 = vmatpush3.bf16.msra.mxu1 %v3168_v10  ;;  %v705_v34 = vmul.f32 0.015625, %v605_v30  ;;  %v658_v10 = vadd.f32 %v390_v51, %v374_v50  ;;  %v3182_v27 = vld [vmem:[#allocation5 + $0x3d8] sm:$0xff]   ;;  %v455_v30 = vunpack.c.l.bf16 %v3534_v12  ;;  %v3556_v51 = vld [vmem:[#allocation2 + $0x2c0] sm:$0xff] }
  0x9c   :  { %2818 = vmatpush3.bf16.msra.mxu0 %v3167_v8  ;;  %2869 = vmatprep.subr.bf16.mxu1 %v3170_v19  ;;  %v707_v35 = vmul.f32 0.015625, %v631_v31  ;;  %v485_v8 = vunpack.c.l.bf16 %v3514_v54  ;;  %v407_v19 = vunpack.c.l.bf16 %v320_v1  ;;  %v456_v31 = vunpack.c.h.bf16 %v3534_v12  ;;  %v3194_v12 = vld [vmem:[#allocation5 + $0x3f0] sm:$0xff]  }
  0x9d   :  { %2847 = vmatprep.subr.bf16.mxu0 %v3169_v15  ;;  %v721_v39 = vpack.c.bf16 %v705_v34, %v705_v34  ;;  %1729 = vmatprep.mubr.bf16.mxu1 %v724_v38  ;;  %v3536_v15 = vld [vmem:[#allocation2 + $0x1b8] sm:$0xff]  ;;  %v659_v22 = vadd.f32 %v658_v10, %v406_v58  ;;  %v3566_v10 = vld [vmem:[#allocation2 + $0x340] sm:$0xff] }
  0x9e   :  { %v723_v40 = vpack.c.bf16 %v707_v35, %v707_v35  ;;  %v471_v34 = vunpack.c.l.bf16 %v3536_v15  ;;  %v472_v35 = vunpack.c.h.bf16 %v3536_v15  ;;  %v3183_v38 = vld [vmem:[#allocation5 + $0x318] sm:$0xff]  }
  0x9f   :  { %1690 = vmatmul.mubr.bf16.vlgmr.msra.gmra.mrb[8].mxu0 %v721_v39  ;;  %v660_v33 = vadd.f32 %v659_v22, %v422_v60  ;;  %v487_v39 = vunpack.c.l.bf16 %v3538_v23  ;;  %v3578_v22 = vld [vmem:[#allocation2 + $0x3c0] sm:$0xff] }
  0xa0   :  { %1730 = vmatmul.mubr.bf16.vlgmr.msra.gmra.mrb[8].mxu1 %v723_v40  ;;  %2848 = vmatpush3.bf16.msra.mxu0 %v3171_v32  ;;  %v3546_v32 = vld [vmem:[#allocation2 + $0x200] sm:$0xff]  ;;  %v488_v40 = vunpack.c.h.bf16 %v3538_v23 }
  0xa1   :  { %2870 = vmatpush3.bf16.msra.mxu1 %v3172_v36  ;;  %2849 = vmatprep.subr.bf16.mxu0 %v3173_v37  ;;  %v684_v36 = vadd.f32 %v392_v18, %v376_v13  ;;  %v3550_v37 = vld [vmem:[#allocation2 + $0x240] sm:$0xff]  ;;  %v1882_v58 = vunpack.c.l.bf16 %v3546_v32  ;;  %v1883_v60 = vunpack.c.h.bf16 %v3546_v32  ;;  %v1915_v13 = vunpack.c.h.bf16 %v3554_v43 }
  0xa2   :  { %2871 = vmatprep.subr.bf16.mxu1 %v3174_v41  ;;  %v645_v41 = vadd.f32 %v389_v56, %v373_v55  ;;  %v1898_v1 = vunpack.c.l.bf16 %v3550_v37  ;;  %v1931_v18 = vunpack.c.h.bf16 %v3556_v51 }
  0xa3   :  { %v685_v50 = vadd.f32 %v684_v36, %v408_v24  ;;  %v3190_v24 = vld [vmem:[#allocation5 + $0x3e8] sm:$0xff]  }
  0xa4   :  { %2850 = vmatpush3.bf16.msra.mxu0 %v3175_v42  ;;  %v671_v42 = vadd.f32 %v391_v17, %v375_v16  ;;  %v646_v55 = vadd.f32 %v645_v41, %v405_v57  ;;  %v3572_v16 = vld [vmem:[#allocation2 + $0x380] sm:$0xff]  ;;  %v1930_v17 = vunpack.c.l.bf16 %v3556_v51  ;;  %v3586_v36 = vld [vmem:[#allocation2 + $0x208] sm:$0xff] }
  0xa5   :  { %2872 = vmatpush3.bf16.msra.mxu1 %v3176_v45  ;;  %2851 = vmatprep.subr.bf16.mxu0 %v3177_v46  ;;  %v3185_v45 = vld [vmem:[#allocation5 + $0x360] sm:$0xff]   ;;  %v661_v46 = vadd.f32 %v660_v33, %v438_v62  ;;  %v686_v7 = vadd.f32 %v685_v50, %v424_v26  ;;  %v1963_v33 = vunpack.c.h.bf16 %v3566_v10  ;;  %v1979_v41 = vunpack.c.h.bf16 %v3572_v16 }
  0xa6   :  { %2873 = vmatprep.subr.bf16.mxu1 %v3178_v2  ;;  %v672_v56 = vadd.f32 %v671_v42, %v407_v19  ;;  %v1899_v2 = vunpack.c.h.bf16 %v3550_v37  ;;  %v647_v47 = vadd.f32 %v646_v55, %v421_v59  ;;  %v3189_v19 = vld [vmem:[#allocation5 + $0x368] sm:$0xff]   ;;  %v1947_v59 = vunpack.c.h.bf16 %v3562_v0 }
  0xa7   :  { %v662_v62 = vadd.f32 %v661_v46, %v454_v4  ;;  %v3188_v4 = vld [vmem:[#allocation5 + $0x3a0] sm:$0xff]   ;;  %v3191_v42 = vld [vmem:[#allocation5 + $0x328] sm:$0xff]  }
  0xa8   :  { %2852 = vmatpush3.bf16.msra.mxu0 %v3179_v14  ;;  %v3187_v14 = vld [vmem:[#allocation5 + $0x320] sm:$0xff]   ;;  %v673_v57 = vadd.f32 %v672_v56, %v423_v25  ;;  %v648_v25 = vadd.f32 %v647_v47, %v437_v61  ;;  %v3609_v56 = vld [vmem:[#allocation2 + $0x2c8] sm:$0xff]  ;;  %v3195_v47 = vld [vmem:[#allocation5 + $0x330] sm:$0xff]  }
  0xa9   :  { %2874 = vmatpush3.bf16.msra.mxu1 %v3180_v20  ;;  %2853 = vmatprep.subr.bf16.mxu0 %v3181_v21  ;;  %v663_v20 = vadd.f32 %v662_v62, %v470_v6  ;;  %v687_v21 = vadd.f32 %v686_v7, %v440_v29  ;;  %v1932_v54 = vunpack.c.l.bf16 %v3609_v56 }
  0xaa   :  { %2875 = vmatprep.subr.bf16.mxu1 %v3182_v27  ;;  %v674_v26 = vadd.f32 %v673_v57, %v439_v28  ;;  %v1962_v27 = vunpack.c.l.bf16 %v3566_v10  ;;  %v649_v49 = vadd.f32 %v648_v25, %v453_v3  ;;  %v1994_v28 = vunpack.c.l.bf16 %v3578_v22  ;;  %v3197_v57 = vld [vmem:[#allocation5 + $0x378] sm:$0xff]   ;;  %v3204_v10 = vld [vmem:[#allocation5 + $0x80] sm:$0xff]  }
  0xab   :  { %v664_v6 = vadd.f32 %v663_v20, %v486_v9  ;;  %v688_v29 = vadd.f32 %v687_v21, %v456_v31  ;;  %v3192_v9 = vld [vmem:[#allocation5 + $0x3a8] sm:$0xff]   ;;  %v3193_v31 = vld [vmem:[#allocation5 + $0x370] sm:$0xff]   ;;  %v1884_v3 = vunpack.c.l.bf16 %v3586_v36  ;;  %v1917_v21 = vunpack.c.h.bf16 %v3602_v52 }
  0xac   :  { %2854 = vmatpush3.bf16.msra.mxu0 %v3183_v38  ;;  %v1978_v38 = vunpack.c.l.bf16 %v3572_v16  ;;  %v675_v61 = vadd.f32 %v674_v26, %v455_v30  ;;  %v650_v30 = vadd.f32 %v649_v49, %v469_v5  ;;  %v3623_v20 = vld [vmem:[#allocation2 + $0x348] sm:$0xff]  ;;  %v1933_v25 = vunpack.c.h.bf16 %v3609_v56  ;;  %v3199_v49 = vld [vmem:[#allocation5 + $0x338] sm:$0xff]  }
  0xad   :  { %2876 = vmatpush3.bf16.msra.mxu1 %v3184_v44  ;;  %2855 = vmatprep.subr.bf16.mxu0 %v3185_v45  ;;  %v2023_v44 = vadd.f32 %v1899_v2, %v1883_v60  ;;  %v3597_v45 = vld [vmem:[#allocation2 + $0x248] sm:$0xff]  ;;  %v665_v46 = vrot.slane %v664_v6, 4  ;;  %v689_v50 = vadd.f32 %v688_v29, %v472_v35  ;;  %v1885_v2 = vunpack.c.h.bf16 %v3586_v36 }
  0xae   :  { %2877 = vmatprep.subr.bf16.mxu1 %v3186_v63  ;;  %v1995_v63 = vunpack.c.h.bf16 %v3578_v22  ;;  %v676_v60 = vadd.f32 %v675_v61, %v471_v34  ;;  %v1900_v7 = vunpack.c.l.bf16 %v3597_v45  ;;  %v651_v53 = vadd.f32 %v650_v30, %v485_v8  ;;  %v3620_v34 = vld [vmem:[#allocation2 + $0x308] sm:$0xff]  ;;  %v3198_v8 = vld [vmem:[#allocation5 + $0x3f8] sm:$0xff]  }
  0xaf   :  { %v2024_v55 = vadd.f32 %v2023_v44, %v1915_v13  ;;  %v666_v35 = vadd.f32 %v665_v46, %v664_v6  ;;  %v690_v62 = vadd.f32 %v689_v50, %v488_v40  ;;  %v1916_v13 = vunpack.c.l.bf16 %v3602_v52  ;;  %v3196_v40 = vld [vmem:[#allocation5 + $0x3b0] sm:$0xff]   ;;  %v3205_v16 = vld [vmem:[#allocation5 + $0x48] sm:$0xff]  }
  0xb0   :  { %2856 = vmatpush3.bf16.msra.mxu0 %v3187_v14  ;;  %v1901_v14 = vunpack.c.h.bf16 %v3597_v45  ;;  %v677_v5 = vadd.f32 %v676_v60, %v487_v39  ;;  %v652_v23 = vrot.slane %v651_v53, 4  ;;  %v1948_v29 = vunpack.c.l.bf16 %v3620_v34 }
  0xb1   :  { %2878 = vmatpush3.bf16.msra.mxu1 %v3188_v4  ;;  %2857 = vmatprep.subr.bf16.mxu0 %v3189_v19  ;;  %v2025_v15 = vadd.f32 %v2024_v55, %v1931_v18  ;;  %v667_v4 = vrot.slane %v666_v35, 2  ;;  %v691_v19 = vrot.slane %v690_v62, 4  ;;  %v1965_v50 = vunpack.c.h.bf16 %v3623_v20 }
  0xb2   :  { %2879 = vmatprep.subr.bf16.mxu1 %v3190_v24  ;;  %v678_v39 = vrot.slane %v677_v5, 4  ;;  %v3627_v24 = vld [vmem:[#allocation2 + $0x388] sm:$0xff]  ;;  %v653_v61 = vadd.f32 %v652_v23, %v651_v53 }
  0xb3   :  { %v2026_v18 = vadd.f32 %v2025_v15, %v1947_v59  ;;  %v668_v26 = vadd.f32 %v667_v4, %v666_v35  ;;  %v692_v6 = vadd.f32 %v691_v19, %v690_v62  ;;  %v3200_v59 = vld [vmem:[#allocation5 + $0x3b8] sm:$0xff]   ;;  %v1980_v52 = vunpack.c.l.bf16 %v3627_v24 }
  0xb4   :  { %2858 = vmatpush3.bf16.msra.mxu0 %v3191_v42  ;;  %v1949_v42 = vunpack.c.h.bf16 %v3620_v34  ;;  %v679_v44 = vadd.f32 %v678_v39, %v677_v5  ;;  %v1981_v55 = vunpack.c.h.bf16 %v3627_v24  ;;  %v2049_v35 = vadd.f32 %v1901_v14, %v1885_v2 }
  0xb5   :  { %2880 = vmatpush3.bf16.msra.mxu1 %v3192_v9  ;;  %2859 = vmatprep.subr.bf16.mxu0 %v3193_v31  ;;  %v2027_v45 = vadd.f32 %v2026_v18, %v1963_v33  ;;  %v1964_v9 = vunpack.c.l.bf16 %v3623_v20  ;;  %v669_v31 = vrot.slane %v668_v26, 1  ;;  %v693_v46 = vrot.slane %v692_v6, 2 }
  0xb6   :  { %2881 = vmatprep.subr.bf16.mxu1 %v3194_v12  ;;  %v654_v12 = vrot.slane %v653_v61, 2  ;;  %v680_v30 = vrot.slane %v679_v44, 2  ;;  %v2010_v62 = vadd.f32 %v1898_v1, %v1882_v58  ;;  %v2036_v15 = vadd.f32 %v1900_v7, %v1884_v3  ;;  %v3202_v1 = vld [vmem:[#allocation5 + $0xc0] sm:$0xff]  }
  0xb7   :  { %v2028_v60 = vadd.f32 %v2027_v45, %v1979_v41  ;;  %v670_v33 = vadd.f32 %v669_v31, %v668_v26  ;;  %v694_v56 = vadd.f32 %v693_v46, %v692_v6  ;;  %v2050_v2 = vadd.f32 %v2049_v35, %v1917_v21  ;;  %v3203_v31 = vld [vmem:[#allocation5] sm:$0xff]   ;;  %v3664_v46 = vld [vmem:[#allocation2 + $0x290] sm:$0xff] }
  0xb8   :  { %2860 = vmatpush3.bf16.msra.mxu0 %v3195_v47  ;;  %v655_v47 = vadd.f32 %v654_v12, %v653_v61  ;;  %v681_v53 = vadd.f32 %v680_v30, %v679_v44  ;;  %v2011_v32 = vadd.f32 %v2010_v62, %v1914_v11  ;;  %v2037_v4 = vadd.f32 %v2036_v15, %v1916_v13  ;;  %v3208_v62 = vld [vmem:[#allocation5 + $0x88] sm:$0xff]   ;;  %v3209_v15 = vld [vmem:[#allocation5 + $0x50] sm:$0xff]  }
  0xb9   :  { %2882 = vmatpush3.bf16.msra.mxu1 %v3196_v40  ;;  %2861 = vmatprep.subr.bf16.mxu0 %v3197_v57  ;;  %v2029_v5 = vadd.f32 %v2028_v60, %v1995_v63  ;;  %v710_v41 = vmul.f32 0.015625, %v670_v33  ;;  %v695_v34 = vrot.slane %v694_v56, 1  ;;  %v3201_v40 = vld [vmem:[#allocation5 + $0x40] sm:$0xff]   ;;  %v1875_v57 = vld [vmem:[#allocation2 + $0x3c8] sm:$0xff]  ;;  %v2051_v36 = vadd.f32 %v2050_v2, %v1933_v25  ;;  %v3668_v33 = vld [vmem:[#allocation2 + $0x2d0] sm:$0xff] }
  0xba   :  { %2883 = vmatprep.subr.bf16.mxu1 %v3198_v8  ;;  %v656_v37 = vrot.slane %v655_v47, 1  ;;  %v682_v58 = vrot.slane %v681_v53, 1  ;;  %v2012_v3 = vadd.f32 %v2011_v32, %v1930_v17  ;;  %v2038_v21 = vadd.f32 %v2037_v4, %v1932_v54  ;;  %v1829_v4 = vld [vmem:[#allocation2 + $0x258] sm:$0xff] }
  0xbb   :  { %v2030_v14 = vrot.slane %v2029_v5, 4  ;;  %v726_v63 = vpack.c.bf16 %v710_v41, %v710_v41  ;;  %v696_v19 = vadd.f32 %v695_v34, %v694_v56  ;;  %v1996_v11 = vunpack.c.l.bf16 %v1875_v57  ;;  %v3210_v41 = vld [vmem:[#allocation5 + $0xd0] sm:$0xff]  }
  0xbc   :  { %2862 = vmatpush3.bf16.msra.mxu0 %v3199_v49  ;;  %v657_v7 = vadd.f32 %v656_v37, %v655_v47  ;;  %v683_v20 = vadd.f32 %v682_v58, %v681_v53  ;;  %v2052_v23 = vadd.f32 %v2051_v36, %v1949_v42  ;;  %v2013_v39 = vadd.f32 %v2012_v3, %v1946_v48  ;;  %v3658_v48 = vld [vmem:[#allocation2 + $0x210] sm:$0xff] }
  0xbd   :  { %2884 = vmatpush3.bf16.msra.mxu1 %v3200_v59  ;;  %2891 = vmatprep.subr.bf16.mxu0 %v3201_v40  ;;  %v2031_v8 = vadd.f32 %v2030_v14, %v2029_v5  ;;  %v712_v43 = vmul.f32 0.015625, %v696_v19  ;;  %v2039_v26 = vadd.f32 %v2038_v21, %v1948_v29  ;;  %v1997_v25 = vunpack.c.h.bf16 %v1875_v57  ;;  %v3660_v42 = vld [vmem:[#allocation2 + $0x250] sm:$0xff]  ;;  %v1821_v57 = vld [vmem:[#allocation2 + $0x218] sm:$0xff] }
  0xbe   :  { %2913 = vmatprep.subr.bf16.mxu1 %v3202_v1  ;;  %1769 = vmatprep.mubr.bf16.mxu0 %v726_v63  ;;  %v709_v18 = vmul.f32 0.015625, %v657_v7  ;;  %v711_v24 = vmul.f32 0.015625, %v683_v20  ;;  %v2053_v49 = vadd.f32 %v2052_v23, %v1965_v50  ;;  %v2014_v51 = vadd.f32 %v2013_v39, %v1962_v27  ;;  %v3671_v5 = vld [vmem:[#allocation2 + $0x310] sm:$0xff]  ;;  %v3684_v39 = vld [vmem:[#allocation2 + $0x298] sm:$0xff] }
  0xbf   :  { %v2032_v13 = vrot.slane %v2031_v8, 2  ;;  %v728_v6 = vpack.c.bf16 %v712_v43, %v712_v43  ;;  %v2040_v44 = vadd.f32 %v2039_v26, %v1964_v9  ;;  %v1887_v30 = vunpack.c.h.bf16 %v3658_v48  ;;  %v3674_v1 = vld [vmem:[#allocation2 + $0x350] sm:$0xff] }
  0xc0   :  { %v725_v17 = vpack.c.bf16 %v709_v18, %v709_v18  ;;  %v727_v61 = vpack.c.bf16 %v711_v24, %v711_v24  ;;  %v2054_v45 = vadd.f32 %v2053_v49, %v1981_v55  ;;  %v2015_v0 = vadd.f32 %v2014_v51, %v1978_v38  ;;  %v3206_v38 = vld [vmem:[#allocation5 + $0xc8] sm:$0xff]   ;;  %v3211_v7 = vld [vmem:[#allocation5 + $0x10] sm:$0xff]   ;;  %v3213_v18 = vld [vmem:[#allocation5 + $0x58] sm:$0xff]  }
  0xc1   :  { %v2033_v54 = vadd.f32 %v2032_v13, %v2031_v8  ;;  %1809 = vmatprep.mubr.bf16.mxu1 %v728_v6  ;;  %v2041_v59 = vadd.f32 %v2040_v44, %v1980_v52  ;;  %v1903_v52 = vunpack.c.h.bf16 %v3660_v42  ;;  %v1919_v22 = vunpack.c.h.bf16 %v3664_v46  ;;  %v3212_v20 = vld [vmem:[#allocation5 + $0x90] sm:$0xff]   ;;  %v3214_v24 = vld [vmem:[#allocation5 + $0xd8] sm:$0xff]  }
  0xc2   :  { %1770 = vmatmul.mubr.bf16.vlgmr.msra.gmra.mrb[12].mxu0 %v725_v17  ;;  %1810 = vmatmul.mubr.bf16.vlgmr.msra.gmra.mrb[12].mxu1 %v727_v61  ;;  %v2055_v27 = vadd.f32 %v2054_v45, %v1997_v25  ;;  %v2016_v9 = vadd.f32 %v2015_v0, %v1994_v28  ;;  %v3207_v28 = vld [vmem:[#allocation5 + $0x8] sm:$0xff]   ;;  %v1935_v2 = vunpack.c.h.bf16 %v3668_v33  ;;  %v1886_v14 = vunpack.c.l.bf16 %v3658_v48  ;;  %v3679_v21 = vld [vmem:[#allocation2 + $0x390] sm:$0xff]  ;;  %v3689_v61 = vld [vmem:[#allocation2 + $0x2d8] sm:$0xff] }
  0xc3   :  { %v2034_v29 = vrot.slane %v2033_v54, 1  ;;  %2892 = vmatpush3.bf16.msra.mxu0 %v3203_v31  ;;  %2914 = vmatpush3.bf16.msra.mxu1 %v3204_v10  ;;  %v2042_v12 = vadd.f32 %v2041_v59, %v1996_v11  ;;  %v2075_v32 = vadd.f32 %v1903_v52, %v1887_v30  ;;  %v1902_v19 = vunpack.c.l.bf16 %v3660_v42  ;;  %v3686_v13 = vld [vmem:[#allocation2 + $0x3d0] sm:$0xff]  ;;  %v3216_v59 = vld [vmem:[#allocation5 + $0x98] sm:$0xff]  }
  0xc4   :  { %2893 = vmatprep.subr.bf16.mxu0 %v3205_v16  ;;  %2915 = vmatprep.subr.bf16.mxu1 %v3206_v38  ;;  %v2056_v60 = vrot.slane %v2055_v27, 4  ;;  %v2017_v55 = vrot.slane %v2016_v9, 4  ;;  %v1951_v36 = vunpack.c.h.bf16 %v3671_v5  ;;  %v1918_v43 = vunpack.c.l.bf16 %v3664_v46  ;;  %v3696_v46 = vld [vmem:[#allocation2 + $0x318] sm:$0xff]  ;;  %v3217_v16 = vld [vmem:[#allocation5 + $0x60] sm:$0xff]  }
  0xc5   :  { %v2035_v50 = vadd.f32 %v2034_v29, %v2033_v54  ;;  %v2043_v35 = vrot.slane %v2042_v12, 4  ;;  %v2076_v3 = vadd.f32 %v2075_v32, %v1919_v22  ;;  %v1934_v11 = vunpack.c.l.bf16 %v3668_v33  ;;  %v3215_v29 = vld [vmem:[#allocation5 + $0x18] sm:$0xff]   ;;  %v3218_v38 = vld [vmem:[#allocation5 + $0xe0] sm:$0xff]  }
  0xc6   :  { %v2057_v47 = vadd.f32 %v2056_v60, %v2055_v27  ;;  %v2018_v53 = vadd.f32 %v2017_v55, %v2016_v9  ;;  %v1950_v23 = vunpack.c.l.bf16 %v3671_v5  ;;  %v1967_v26 = vunpack.c.h.bf16 %v3674_v1 }
  0xc7   :  { %v2219_v56 = vmul.f32 0.015625, %v2035_v50  ;;  %2894 = vmatpush3.bf16.msra.mxu0 %v3207_v28  ;;  %2916 = vmatpush3.bf16.msra.mxu1 %v3208_v62  ;;  %v2044_v40 = vadd.f32 %v2043_v35, %v2042_v12  ;;  %v2077_v6 = vadd.f32 %v2076_v3, %v1935_v2  ;;  %v1889_v25 = vunpack.c.h.bf16 %v1821_v57  ;;  %v3704_v2 = vld [vmem:[#allocation2 + $0x398] sm:$0xff]  ;;  %v3711_v3 = vld [vmem:[#allocation2 + $0x260] sm:$0xff] }
  0xc8   :  { %2895 = vmatprep.subr.bf16.mxu0 %v3209_v15  ;;  %2917 = vmatprep.subr.bf16.mxu1 %v3210_v41  ;;  %v2058_v37 = vrot.slane %v2057_v47, 2  ;;  %v2019_v58 = vrot.slane %v2018_v53, 2  ;;  %v1905_v49 = vunpack.c.h.bf16 %v1829_v4  ;;  %v1888_v54 = vunpack.c.l.bf16 %v1821_v57  ;;  %v3219_v15 = vld [vmem:[#allocation5 + $0x20] sm:$0xff]  }
  0xc9   :  { %v2235_v34 = vpack.c.bf16 %v2219_v56, %v2219_v56  ;;  %v2045_v63 = vrot.slane %v2044_v40, 2  ;;  %v1904_v44 = vunpack.c.l.bf16 %v1829_v4  ;;  %v1983_v0 = vunpack.c.h.bf16 %v3679_v21  ;;  %v3700_v56 = vld [vmem:[#allocation2 + $0x358] sm:$0xff]  ;;  %v3220_v41 = vld [vmem:[#allocation5 + $0xa0] sm:$0xff]  }
  0xca   :  { %v2059_v8 = vadd.f32 %v2058_v37, %v2057_v47  ;;  %v2020_v17 = vadd.f32 %v2019_v58, %v2018_v53  ;;  %v2078_v48 = vadd.f32 %v2077_v6, %v1951_v36  ;;  %v1921_v42 = vunpack.c.h.bf16 %v3684_v39  ;;  %v3221_v58 = vld [vmem:[#allocation5 + $0x68] sm:$0xff]   ;;  %v3709_v36 = vld [vmem:[#allocation2 + $0x220] sm:$0xff] }
  0xcb   :  { %2282 = vmatprep.mubr.bf16.mxu0 %v2235_v34  ;;  %2896 = vmatpush3.bf16.msra.mxu0 %v3211_v7  ;;  %v2046_v45 = vadd.f32 %v2045_v63, %v2044_v40  ;;  %v1966_v10 = vunpack.c.l.bf16 %v3674_v1  ;;  %v1982_v27 = vunpack.c.l.bf16 %v3679_v21  ;;  %v1999_v9 = vunpack.c.h.bf16 %v3686_v13 }
  0xcc   :  { %2918 = vmatpush3.bf16.msra.mxu1 %v3212_v20  ;;  %2897 = vmatprep.subr.bf16.mxu0 %v3213_v18  ;;  %v2060_v51 = vrot.slane %v2059_v8, 1  ;;  %v2079_v50 = vadd.f32 %v2078_v48, %v1967_v26  ;;  %v1920_v12 = vunpack.c.l.bf16 %v3684_v39  ;;  %v1937_v30 = vunpack.c.h.bf16 %v3689_v61  ;;  %v3713_v20 = vld [vmem:[#allocation2 + $0x3d8] sm:$0xff] }
  0xcd   :  { %2919 = vmatprep.subr.bf16.mxu1 %v3214_v24  ;;  %v2101_v52 = vadd.f32 %v1905_v49, %v1889_v25  ;;  %v2021_v55 = vrot.slane %v2020_v17, 1  ;;  %v2062_v35 = vadd.f32 %v1902_v19, %v1886_v14  ;;  %v2088_v22 = vadd.f32 %v1904_v44, %v1888_v54  ;;  %v3222_v14 = vld [vmem:[#allocation5 + $0xe8] sm:$0xff]   ;;  %v3719_v25 = vld [vmem:[#allocation2 + $0x2a0] sm:$0xff]  ;;  %v3226_v44 = vld [vmem:[#allocation5 + $0xf0] sm:$0xff]  }
  0xce   :  { %v2061_v31 = vadd.f32 %v2060_v51, %v2059_v8  ;;  %v2047_v28 = vrot.slane %v2046_v45, 1  ;;  %v2080_v62 = vadd.f32 %v2079_v50, %v1983_v0  ;;  %v1953_v47 = vunpack.c.h.bf16 %v3696_v46  ;;  %v3223_v49 = vld [vmem:[#allocation5 + $0x28] sm:$0xff]   ;;  %v3733_v50 = vld [vmem:[#allocation2 + $0x320] sm:$0xff] }
  0xcf   :  { %2898 = vmatpush3.bf16.msra.mxu0 %v3215_v29  ;;  %v2102_v53 = vadd.f32 %v2101_v52, %v1921_v42  ;;  %v1998_v40 = vunpack.c.l.bf16 %v3686_v13  ;;  %v1936_v32 = vunpack.c.l.bf16 %v3689_v61  ;;  %v2063_v37 = vadd.f32 %v2062_v35, %v1918_v43  ;;  %v3224_v51 = vld [vmem:[#allocation5 + $0xa8] sm:$0xff]   ;;  %v3727_v29 = vld [vmem:[#allocation2 + $0x2e0] sm:$0xff] }
  0xd0   :  { %2920 = vmatpush3.bf16.msra.mxu1 %v3216_v59  ;;  %2899 = vmatprep.subr.bf16.mxu0 %v3217_v16  ;;  %v2221_v60 = vmul.f32 0.015625, %v2061_v31  ;;  %v2081_v57 = vadd.f32 %v2080_v62, %v1999_v9  ;;  %v1952_v4 = vunpack.c.l.bf16 %v3696_v46  ;;  %v1969_v63 = vunpack.c.h.bf16 %v3700_v56 }
  0xd1   :  { %2921 = vmatprep.subr.bf16.mxu1 %v3218_v38  ;;  %v2103_v19 = vadd.f32 %v2102_v53, %v1937_v30  ;;  %v2022_v7 = vadd.f32 %v2021_v55, %v2020_v17  ;;  %v1968_v8 = vunpack.c.l.bf16 %v3700_v56  ;;  %v2064_v43 = vadd.f32 %v2063_v37, %v1934_v11  ;;  %v3225_v11 = vld [vmem:[#allocation5 + $0x70] sm:$0xff]   ;;  %v3229_v55 = vld [vmem:[#allocation5 + $0x78] sm:$0xff]   ;;  %v3747_v37 = vld [vmem:[#allocation2 + $0x228] sm:$0xff] }
  0xd2   :  { %v2237_v34 = vpack.c.bf16 %v2221_v60, %v2221_v60  ;;  %v2089_v39 = vadd.f32 %v2088_v22, %v1920_v12  ;;  %v2048_v18 = vadd.f32 %v2047_v28, %v2046_v45  ;;  %v2082_v24 = vrot.slane %v2081_v57, 4  ;;  %v3227_v12 = vld [vmem:[#allocation5 + $0x30] sm:$0xff]   ;;  %v3230_v56 = vld [vmem:[#allocation5 + $0xf8] sm:$0xff]   ;;  %v3738_v28 = vld [vmem:[#allocation2 + $0x360] sm:$0xff] }
  0xd3   :  { %2900 = vmatpush3.bf16.msra.mxu0 %v3219_v15  ;;  %v1985_v26 = vunpack.c.h.bf16 %v3704_v2  ;;  %v2104_v6 = vadd.f32 %v2103_v19, %v1953_v47  ;;  %v2065_v17 = vadd.f32 %v2064_v43, %v1950_v23  ;;  %v1891_v54 = vunpack.c.h.bf16 %v3709_v36  ;;  %v3228_v30 = vld [vmem:[#allocation5 + $0xb0] sm:$0xff]   ;;  %v3233_v19 = vld [vmem:[#allocation5 + $0x140] sm:$0xff]  }
  0xd4   :  { %2922 = vmatpush3.bf16.msra.mxu1 %v3220_v41  ;;  %2901 = vmatprep.subr.bf16.mxu0 %v3221_v58  ;;  %v2090_v61 = vadd.f32 %v2089_v39, %v1936_v32  ;;  %v1907_v33 = vunpack.c.h.bf16 %v3711_v3  ;;  %v2083_v45 = vadd.f32 %v2082_v24, %v2081_v57  ;;  %v1984_v0 = vunpack.c.l.bf16 %v3704_v2  ;;  %v3743_v2 = vld [vmem:[#allocation2 + $0x3a0] sm:$0xff]  ;;  %v3231_v58 = vld [vmem:[#allocation5 + $0x38] sm:$0xff]  }
  0xd5   :  { %2923 = vmatprep.subr.bf16.mxu1 %v3222_v14  ;;  %2322 = vmatprep.mubr.bf16.mxu1 %v2237_v34  ;;  %v2001_v48 = vunpack.c.h.bf16 %v3713_v20  ;;  %v2105_v42 = vadd.f32 %v2104_v6, %v1969_v63  ;;  %v2000_v5 = vunpack.c.l.bf16 %v3713_v20  ;;  %v2066_v23 = vadd.f32 %v2065_v17, %v1966_v10  ;;  %v3745_v32 = vld [vmem:[#allocation2 + $0x3e0] sm:$0xff]  ;;  %v3232_v14 = vld [vmem:[#allocation5 + $0xb8] sm:$0xff]   ;;  %v1831_v63 = vld [vmem:[#allocation2 + $0x268] sm:$0xff] }
  0xd6   :  { %v2091_v59 = vadd.f32 %v2090_v61, %v1952_v4  ;;  %v1923_v31 = vunpack.c.h.bf16 %v3719_v25  ;;  %v2218_v9 = vmul.f32 0.015625, %v2022_v7  ;;  %v2220_v46 = vmul.f32 0.015625, %v2048_v18  ;;  %v3234_v7 = vld [vmem:[#allocation5 + $0x1c0] sm:$0xff]   ;;  %v1839_v6 = vld [vmem:[#allocation2 + $0x2a8] sm:$0xff] }
  0xd7   :  { %2902 = vmatpush3.bf16.msra.mxu0 %v3223_v49  ;;  %v2084_v16 = vrot.slane %v2083_v45, 2  ;;  %v2106_v38 = vadd.f32 %v2105_v42, %v1985_v26  ;;  %v2067_v52 = vadd.f32 %v2066_v23, %v1982_v27  ;;  %v1939_v1 = vunpack.c.h.bf16 %v3727_v29  ;;  %v3238_v42 = vld [vmem:[#allocation5 + $0x1c8] sm:$0xff]  }
  0xd8   :  { %2924 = vmatpush3.bf16.msra.mxu1 %v3224_v51  ;;  %2903 = vmatprep.subr.bf16.mxu0 %v3225_v11  ;;  %v2092_v60 = vadd.f32 %v2091_v59, %v1968_v8  ;;  %v2127_v10 = vadd.f32 %v1907_v33, %v1891_v54  ;;  %v1955_v53 = vunpack.c.h.bf16 %v3733_v50  ;;  %v2234_v27 = vpack.c.bf16 %v2218_v9, %v2218_v9  ;;  %v3755_v54 = vld [vmem:[#allocation2 + $0x2e8] sm:$0xff]  ;;  %v3235_v11 = vld [vmem:[#allocation5 + $0x100] sm:$0xff]  }
  0xd9   :  { %2925 = vmatprep.subr.bf16.mxu1 %v3226_v44  ;;  %v2085_v35 = vadd.f32 %v2084_v16, %v2083_v45  ;;  %v2107_v22 = vadd.f32 %v2106_v38, %v2001_v48  ;;  %v2068_v62 = vadd.f32 %v2067_v52, %v1998_v40  ;;  %v2236_v15 = vpack.c.bf16 %v2220_v46, %v2220_v46  ;;  %v3237_v48 = vld [vmem:[#allocation5 + $0x148] sm:$0xff]  }
  0xda   :  { %v2093_v47 = vadd.f32 %v2092_v60, %v1984_v0  ;;  %v2128_v21 = vadd.f32 %v2127_v10, %v1923_v31  ;;  %v1971_v57 = vunpack.c.h.bf16 %v3738_v28  ;;  %v1890_v43 = vunpack.c.l.bf16 %v3709_v36  ;;  %v3236_v36 = vld [vmem:[#allocation5 + $0x180] sm:$0xff]   ;;  %v3759_v46 = vld [vmem:[#allocation2 + $0x328] sm:$0xff] }
  0xdb   :  { %2904 = vmatpush3.bf16.msra.mxu0 %v3227_v12  ;;  %v2086_v41 = vrot.slane %v2085_v35, 1  ;;  %v2108_v34 = vrot.slane %v2107_v22, 4  ;;  %v2069_v13 = vrot.slane %v2068_v62, 4  ;;  %v1906_v39 = vunpack.c.l.bf16 %v3711_v3  ;;  %v3240_v10 = vld [vmem:[#allocation5 + $0x188] sm:$0xff]  }
  0xdc   :  { %2926 = vmatpush3.bf16.msra.mxu1 %v3228_v30  ;;  %2905 = vmatprep.subr.bf16.mxu0 %v3229_v55  ;;  %v2094_v40 = vadd.f32 %v2093_v47, %v2000_v5  ;;  %v2129_v4 = vadd.f32 %v2128_v21, %v1939_v1  ;;  %v1987_v18 = vunpack.c.h.bf16 %v3743_v2  ;;  %v2003_v24 = vunpack.c.h.bf16 %v3745_v32  ;;  %v3239_v1 = vld [vmem:[#allocation5 + $0x108] sm:$0xff]   ;;  %v3242_v47 = vld [vmem:[#allocation5 + $0x1d0] sm:$0xff]  }
  0xdd   :  { %2927 = vmatprep.subr.bf16.mxu1 %v3230_v56  ;;  %v2087_v20 = vadd.f32 %v2086_v41, %v2085_v35  ;;  %v2109_v8 = vadd.f32 %v2108_v34, %v2107_v22  ;;  %v1893_v49 = vunpack.c.h.bf16 %v3747_v37  ;;  %v1909_v33 = vunpack.c.h.bf16 %v1831_v63  ;;  %v3763_v35 = vld [vmem:[#allocation2 + $0x368] sm:$0xff] }
  0xde   :  { %v2130_v26 = vadd.f32 %v2129_v4, %v1955_v53  ;;  %v2095_v61 = vrot.slane %v2094_v40, 4  ;;  %v2070_v3 = vadd.f32 %v2069_v13, %v2068_v62  ;;  %v1892_v45 = vunpack.c.l.bf16 %v3747_v37  ;;  %v3241_v62 = vld [vmem:[#allocation5 + $0x150] sm:$0xff]   ;;  %v3766_v34 = vld [vmem:[#allocation2 + $0x3a8] sm:$0xff] }
  0xdf   :  { %2906 = vmatpush3.bf16.msra.mxu0 %v3231_v58  ;;  %v2223_v51 = vmul.f32 0.015625, %v2087_v20  ;;  %v2110_v17 = vrot.slane %v2109_v8, 2  ;;  %v1908_v0 = vunpack.c.l.bf16 %v1831_v63  ;;  %v1922_v59 = vunpack.c.l.bf16 %v3719_v25  ;;  %v3244_v4 = vld [vmem:[#allocation5 + $0x190] sm:$0xff]   ;;  %v3771_v20 = vld [vmem:[#allocation2 + $0x3e8] sm:$0xff] }
  0xe0   :  { %2928 = vmatpush3.bf16.msra.mxu1 %v3232_v14  ;;  %2935 = vmatprep.subr.bf16.mxu0 %v3233_v19  ;;  %v2131_v44 = vadd.f32 %v2130_v26, %v1971_v57  ;;  %v1925_v31 = vunpack.c.h.bf16 %v1839_v6  ;;  %v1924_v16 = vunpack.c.l.bf16 %v1839_v6  ;;  %v1941_v38 = vunpack.c.h.bf16 %v3755_v54  ;;  %v3243_v57 = vld [vmem:[#allocation5 + $0x110] sm:$0xff]  }
  0xe1   :  { %2957 = vmatprep.subr.bf16.mxu1 %v3234_v7  ;;  %v2239_v5 = vpack.c.bf16 %v2223_v51, %v2223_v51  ;;  %v2111_v23 = vadd.f32 %v2110_v17, %v2109_v8  ;;  %v2096_v30 = vadd.f32 %v2095_v61, %v2094_v40  ;;  %v2153_v52 = vadd.f32 %v1909_v33, %v1893_v49  ;;  %v3245_v8 = vld [vmem:[#allocation5 + $0x158] sm:$0xff]   ;;  %v3778_v33 = vld [vmem:[#allocation2 + $0x270] sm:$0xff] }
  0xe2   :  { %2283 = vmatmul.mubr.bf16.vlgmr.msra.gmra.mrb[16].mxu0 %v2234_v27  ;;  %v2132_v9 = vadd.f32 %v2131_v44, %v1987_v18  ;;  %v2114_v60 = vadd.f32 %v1906_v39, %v1890_v43  ;;  %v2071_v55 = vrot.slane %v2070_v3, 2  ;;  %v1938_v56 = vunpack.c.l.bf16 %v3727_v29  ;;  %v3246_v43 = vld [vmem:[#allocation5 + $0x1d8] sm:$0xff]   ;;  %v3249_v44 = vld [vmem:[#allocation5 + $0x160] sm:$0xff]  }
  0xe3   :  { %2323 = vmatmul.mubr.bf16.vlgmr.msra.gmra.mrb[16].mxu1 %v2236_v15  ;;  %2936 = vmatpush3.bf16.msra.mxu0 %v3235_v11  ;;  %v2112_v12 = vrot.slane %v2111_v23, 1  ;;  %v2140_v22 = vadd.f32 %v1908_v0, %v1892_v45  ;;  %v1957_v21 = vunpack.c.h.bf16 %v3759_v46  ;;  %v2154_v27 = vadd.f32 %v2153_v52, %v1925_v31  ;;  %v3247_v11 = vld [vmem:[#allocation5 + $0x118] sm:$0xff]   ;;  %v3250_v45 = vld [vmem:[#allocation5 + $0x1e0] sm:$0xff]  }
  0xe4   :  { %2958 = vmatpush3.bf16.msra.mxu1 %v3236_v36  ;;  %2937 = vmatprep.subr.bf16.mxu0 %v3237_v48  ;;  %v2133_v25 = vadd.f32 %v2132_v9, %v2003_v24  ;;  %v2115_v15 = vadd.f32 %v2114_v60, %v1922_v59  ;;  %v1940_v37 = vunpack.c.l.bf16 %v3755_v54  ;;  %v2097_v14 = vrot.slane %v2096_v30, 2  ;;  %v3776_v54 = vld [vmem:[#allocation2 + $0x230] sm:$0xff]  ;;  %v3248_v36 = vld [vmem:[#allocation5 + $0x198] sm:$0xff]  }
  0xe5   :  { %2959 = vmatprep.subr.bf16.mxu1 %v3238_v42  ;;  %2362 = vmatprep.mubr.bf16.mxu0 %v2239_v5  ;;  %v2113_v53 = vadd.f32 %v2112_v12, %v2111_v23  ;;  %v2141_v58 = vadd.f32 %v2140_v22, %v1924_v16  ;;  %v1973_v13 = vunpack.c.h.bf16 %v3763_v35  ;;  %v2155_v40 = vadd.f32 %v2154_v27, %v1941_v38  ;;  %v3782_v23 = vld [vmem:[#allocation2 + $0x2b0] sm:$0xff]  ;;  %v3251_v12 = vld [vmem:[#allocation5 + $0x120] sm:$0xff]  }
  0xe6   :  { %v2134_v41 = vrot.slane %v2133_v25, 4  ;;  %v2072_v63 = vadd.f32 %v2071_v55, %v2070_v3  ;;  %v1954_v19 = vunpack.c.l.bf16 %v3733_v50  ;;  %v1989_v18 = vunpack.c.h.bf16 %v3766_v34  ;;  %v3791_v22 = vld [vmem:[#allocation2 + $0x330] sm:$0xff] }
  0xe7   :  { %2938 = vmatpush3.bf16.msra.mxu0 %v3239_v1  ;;  %v2225_v29 = vmul.f32 0.015625, %v2113_v53  ;;  %v2156_v24 = vadd.f32 %v2155_v40, %v1957_v21  ;;  %v2116_v26 = vadd.f32 %v2115_v15, %v1938_v56  ;;  %v1956_v49 = vunpack.c.l.bf16 %v3759_v46  ;;  %v3253_v1 = vld [vmem:[#allocation5 + $0x168] sm:$0xff]   ;;  %v3794_v15 = vld [vmem:[#allocation2 + $0x370] sm:$0xff] }
  0xe8   :  { %2960 = vmatpush3.bf16.msra.mxu1 %v3240_v10  ;;  %2939 = vmatprep.subr.bf16.mxu0 %v3241_v62  ;;  %v2135_v7 = vadd.f32 %v2134_v41, %v2133_v25  ;;  %v2142_v51 = vadd.f32 %v2141_v58, %v1940_v37  ;;  %v2098_v17 = vadd.f32 %v2097_v14, %v2096_v30  ;;  %v2005_v50 = vunpack.c.h.bf16 %v3771_v20  ;;  %v3252_v30 = vld [vmem:[#allocation5 + $0x1a0] sm:$0xff]   ;;  %v3254_v10 = vld [vmem:[#allocation5 + $0x1e8] sm:$0xff]   ;;  %v3798_v14 = vld [vmem:[#allocation2 + $0x238] sm:$0xff] }
  0xe9   :  { %2961 = vmatprep.subr.bf16.mxu1 %v3242_v47  ;;  %v2241_v39 = vpack.c.bf16 %v2225_v29, %v2225_v29  ;;  %v2157_v61 = vadd.f32 %v2156_v24, %v1973_v13  ;;  %v1970_v3 = vunpack.c.l.bf16 %v3738_v28  ;;  %v2073_v0 = vrot.slane %v2072_v63, 1  ;;  %v3786_v28 = vld [vmem:[#allocation2 + $0x2f0] sm:$0xff]  ;;  %v3255_v41 = vld [vmem:[#allocation5 + $0x128] sm:$0xff]   ;;  %v3800_v13 = vld [vmem:[#allocation2 + $0x278] sm:$0xff] }
  0xea   :  { %v2136_v6 = vrot.slane %v2135_v7, 2  ;;  %v1972_v48 = vunpack.c.l.bf16 %v3763_v35  ;;  %v2117_v5 = vadd.f32 %v2116_v26, %v1954_v19  ;;  %v2143_v31 = vadd.f32 %v2142_v51, %v1956_v49  ;;  %v3256_v37 = vld [vmem:[#allocation5 + $0x1a8] sm:$0xff]   ;;  %v3257_v40 = vld [vmem:[#allocation5 + $0x170] sm:$0xff]   ;;  %v3806_v24 = vld [vmem:[#allocation2 + $0x2b8] sm:$0xff] }
  0xeb   :  { %2940 = vmatpush3.bf16.msra.mxu0 %v3243_v57  ;;  %2402 = vmatprep.mubr.bf16.mxu1 %v2241_v39  ;;  %v2158_v42 = vadd.f32 %v2157_v61, %v1989_v18  ;;  %v1895_v9 = vunpack.c.h.bf16 %v3776_v54  ;;  %v1911_v46 = vunpack.c.h.bf16 %v3778_v33  ;;  %v2099_v16 = vrot.slane %v2098_v17, 1  ;;  %v3258_v57 = vld [vmem:[#allocation5 + $0x1f0] sm:$0xff]  }
  0xec   :  { %2962 = vmatpush3.bf16.msra.mxu1 %v3244_v4  ;;  %2941 = vmatprep.subr.bf16.mxu0 %v3245_v8  ;;  %v2137_v59 = vadd.f32 %v2136_v6, %v2135_v7  ;;  %v1986_v52 = vunpack.c.l.bf16 %v3743_v2  ;;  %v1927_v60 = vunpack.c.h.bf16 %v3782_v23  ;;  %v2074_v55 = vadd.f32 %v2073_v0, %v2072_v63  ;;  %v3803_v8 = vld [vmem:[#allocation2 + $0x3b0] sm:$0xff] }
  0xed   :  { %2963 = vmatprep.subr.bf16.mxu1 %v3246_v43  ;;  %v2159_v38 = vadd.f32 %v2158_v42, %v2005_v50  ;;  %v1988_v56 = vunpack.c.l.bf16 %v3766_v34  ;;  %v2118_v35 = vadd.f32 %v2117_v5, %v1970_v3  ;;  %v2144_v47 = vadd.f32 %v2143_v31, %v1972_v48  ;;  %v3808_v49 = vld [vmem:[#allocation2 + $0x3f0] sm:$0xff]  ;;  %v3261_v3 = vld [vmem:[#allocation5 + $0x178] sm:$0xff]  }
  0xee   :  { %v2138_v62 = vrot.slane %v2137_v59, 1  ;;  %v1943_v53 = vunpack.c.h.bf16 %v3786_v28  ;;  %v2179_v21 = vadd.f32 %v1911_v46, %v1895_v9  ;;  %v2100_v27 = vadd.f32 %v2099_v16, %v2098_v17  ;;  %v3260_v50 = vld [vmem:[#allocation5 + $0x1b0] sm:$0xff]   ;;  %v3817_v46 = vld [vmem:[#allocation2 + $0x338] sm:$0xff] }
  0xef   :  { %2942 = vmatpush3.bf16.msra.mxu0 %v3247_v11  ;;  %v2160_v25 = vrot.slane %v2159_v38, 4  ;;  %v2002_v58 = vunpack.c.l.bf16 %v3745_v32  ;;  %v1959_v34 = vunpack.c.h.bf16 %v3791_v22  ;;  %v2222_v4 = vmul.f32 0.015625, %v2074_v55 }
  0xf0   :  { %2964 = vmatpush3.bf16.msra.mxu1 %v3248_v36  ;;  %2943 = vmatprep.subr.bf16.mxu0 %v3249_v44  ;;  %v2180_v29 = vadd.f32 %v2179_v21, %v1927_v60  ;;  %v2004_v63 = vunpack.c.l.bf16 %v3771_v20  ;;  %v2119_v7 = vadd.f32 %v2118_v35, %v1986_v52  ;;  %v2139_v43 = vadd.f32 %v2138_v62, %v2137_v59  ;;  %v3259_v20 = vld [vmem:[#allocation5 + $0x130] sm:$0xff]   ;;  %v3813_v36 = vld [vmem:[#allocation2 + $0x2f8] sm:$0xff]  ;;  %v3266_v35 = vld [vmem:[#allocation5 + $0x2c0] sm:$0xff]  }
  0xf1   :  { %2965 = vmatprep.subr.bf16.mxu1 %v3250_v45  ;;  %v2161_v2 = vadd.f32 %v2160_v25, %v2159_v38  ;;  %v2145_v32 = vadd.f32 %v2144_v47, %v1988_v56  ;;  %v1975_v39 = vunpack.c.h.bf16 %v3794_v15  ;;  %v2224_v26 = vmul.f32 0.015625, %v2100_v27  ;;  %v3262_v44 = vld [vmem:[#allocation5 + $0x1f8] sm:$0xff]   ;;  %v3265_v25 = vld [vmem:[#allocation5 + $0x240] sm:$0xff]  }
  0xf2   :  { %v2181_v18 = vadd.f32 %v2180_v29, %v1943_v53  ;;  %v1897_v51 = vunpack.c.h.bf16 %v3798_v14  ;;  %v1913_v17 = vunpack.c.h.bf16 %v3800_v13  ;;  %v1991_v61 = vunpack.c.h.bf16 %v3803_v8  ;;  %v3263_v52 = vld [vmem:[#allocation5 + $0x138] sm:$0xff]  }
  0xf3   :  { %2944 = vmatpush3.bf16.msra.mxu0 %v3251_v12  ;;  %v2162_v19 = vrot.slane %v2161_v2, 2  ;;  %v2238_v45 = vpack.c.bf16 %v2222_v4, %v2222_v4  ;;  %v2120_v48 = vadd.f32 %v2119_v7, %v2002_v58  ;;  %v1929_v42 = vunpack.c.h.bf16 %v3806_v24  ;;  %v3264_v60 = vld [vmem:[#allocation5 + $0x1b8] sm:$0xff]  }
  0xf4   :  { %2966 = vmatpush3.bf16.msra.mxu1 %v3252_v30  ;;  %2945 = vmatprep.subr.bf16.mxu0 %v3253_v1  ;;  %v2182_v11 = vadd.f32 %v2181_v18, %v1959_v34  ;;  %v2227_v5 = vmul.f32 0.015625, %v2139_v43  ;;  %v2146_v59 = vadd.f32 %v2145_v32, %v2004_v63  ;;  %v2007_v31 = vunpack.c.h.bf16 %v3808_v49  ;;  %v3822_v56 = vld [vmem:[#allocation2 + $0x378] sm:$0xff]  ;;  %v3269_v63 = vld [vmem:[#allocation5 + $0x248] sm:$0xff]  }
  0xf5   :  { %2967 = vmatprep.subr.bf16.mxu1 %v3254_v10  ;;  %v2163_v6 = vadd.f32 %v2162_v19, %v2161_v2  ;;  %v2240_v16 = vpack.c.bf16 %v2224_v26, %v2224_v26  ;;  %v1945_v12 = vunpack.c.h.bf16 %v3813_v36  ;;  %v2205_v30 = vadd.f32 %v1913_v17, %v1897_v51  ;;  %v3830_v4 = vld [vmem:[#allocation2 + $0x3f8] sm:$0xff]  ;;  %v3270_v19 = vld [vmem:[#allocation5 + $0x2c8] sm:$0xff]  }
  0xf6   :  { %v2183_v9 = vadd.f32 %v2182_v11, %v1975_v39  ;;  %v1894_v1 = vunpack.c.l.bf16 %v3776_v54  ;;  %v1910_v10 = vunpack.c.l.bf16 %v3778_v33  ;;  %v2121_v47 = vrot.slane %v2120_v48, 4 }
  0xf7   :  { %2946 = vmatpush3.bf16.msra.mxu0 %v3255_v41  ;;  %v2164_v0 = vrot.slane %v2163_v6, 1  ;;  %v1961_v53 = vunpack.c.h.bf16 %v3817_v46  ;;  %v2206_v21 = vadd.f32 %v2205_v30, %v1929_v42  ;;  %v2243_v27 = vpack.c.bf16 %v2227_v5, %v2227_v5 }
  0xf8   :  { %2968 = vmatpush3.bf16.msra.mxu1 %v3256_v37  ;;  %2947 = vmatprep.subr.bf16.mxu0 %v3257_v40  ;;  %v2184_v55 = vadd.f32 %v2183_v9, %v1991_v61  ;;  %v2147_v2 = vrot.slane %v2146_v59, 4  ;;  %v3825_v37 = vld [vmem:[#allocation2 + $0x3b8] sm:$0xff]  ;;  %v1896_v54 = vunpack.c.l.bf16 %v3798_v14  ;;  %v1912_v58 = vunpack.c.l.bf16 %v3800_v13  ;;  %v3267_v40 = vld [vmem:[#allocation5 + $0x200] sm:$0xff]   ;;  %v3274_v61 = vld [vmem:[#allocation5 + $0x2d0] sm:$0xff]  }
  0xf9   :  { %2969 = vmatprep.subr.bf16.mxu1 %v3258_v57  ;;  %v2165_v38 = vadd.f32 %v2164_v0, %v2163_v6  ;;  %v1977_v34 = vunpack.c.h.bf16 %v3822_v56  ;;  %v2207_v29 = vadd.f32 %v2206_v21, %v1945_v12  ;;  %v3268_v57 = vld [vmem:[#allocation5 + $0x280] sm:$0xff]   ;;  %v1926_v14 = vunpack.c.l.bf16 %v3782_v23  ;;  %v3273_v23 = vld [vmem:[#allocation5 + $0x250] sm:$0xff]   ;;  %v3277_v9 = vld [vmem:[#allocation5 + $0x258] sm:$0xff]  }
  0xfa   :  { %v2185_v41 = vadd.f32 %v2184_v55, %v2007_v31  ;;  %v1993_v7 = vunpack.c.h.bf16 %v3825_v37  ;;  %v2122_v13 = vadd.f32 %v2121_v47, %v2120_v48  ;;  %v2148_v32 = vadd.f32 %v2147_v2, %v2146_v59  ;;  %v3275_v59 = vld [vmem:[#allocation5 + $0x210] sm:$0xff]   ;;  %v3279_v55 = vld [vmem:[#allocation5 + $0x218] sm:$0xff]  }
  0xfb   :  { %2948 = vmatpush3.bf16.msra.mxu0 %v3259_v20  ;;  %v2229_v62 = vmul.f32 0.015625, %v2165_v38  ;;  %v2208_v43 = vadd.f32 %v2207_v29, %v1961_v53  ;;  %v1928_v18 = vunpack.c.l.bf16 %v3806_v24  ;;  %v2009_v26 = vunpack.c.h.bf16 %v3830_v4  ;;  %v3271_v20 = vld [vmem:[#allocation5 + $0x208] sm:$0xff]   ;;  %v3276_v31 = vld [vmem:[#allocation5 + $0x290] sm:$0xff]  }
  0xfc   :  { %2970 = vmatpush3.bf16.msra.mxu1 %v3260_v50  ;;  %2949 = vmatprep.subr.bf16.mxu0 %v3261_v3  ;;  %v2186_v39 = vrot.slane %v2185_v41, 4  ;;  %v2166_v51 = vadd.f32 %v1910_v10, %v1894_v1  ;;  %v2192_v17 = vadd.f32 %v1912_v58, %v1896_v54  ;;  %v3272_v50 = vld [vmem:[#allocation5 + $0x288] sm:$0xff]   ;;  %v2123_v3 = vrot.slane %v2122_v13, 2  ;;  %v3284_v58 = vld [vmem:[#allocation5 + $0x2a0] sm:$0xff]  }
  0xfd   :  { %2971 = vmatprep.subr.bf16.mxu1 %v3262_v44  ;;  %v2245_v33 = vpack.c.bf16 %v2229_v62, %v2229_v62  ;;  %v2209_v6 = vadd.f32 %v2208_v43, %v1977_v34  ;;  %v2149_v44 = vrot.slane %v2148_v32, 2  ;;  %v1944_v24 = vunpack.c.l.bf16 %v3813_v36  ;;  %v3282_v62 = vld [vmem:[#allocation5 + $0x2e0] sm:$0xff]   ;;  %v3285_v34 = vld [vmem:[#allocation5 + $0x268] sm:$0xff]  }
  0xfe   :  { %v2187_v0 = vadd.f32 %v2186_v39, %v2185_v41  ;;  %v2167_v42 = vadd.f32 %v2166_v51, %v1926_v14  ;;  %v2193_v5 = vadd.f32 %v2192_v17, %v1928_v18  ;;  %v2124_v12 = vadd.f32 %v2123_v3, %v2122_v13  ;;  %v3286_v29 = vld [vmem:[#allocation5 + $0x2e8] sm:$0xff]   ;;  %v3290_v39 = vld [vmem:[#allocation5 + $0x2f0] sm:$0xff]  }
  0xff   :  { %2950 = vmatpush3.bf16.msra.mxu0 %v3263_v52  ;;  %v2210_v11 = vadd.f32 %v2209_v6, %v1993_v7  ;;  %v1958_v30 = vunpack.c.l.bf16 %v3791_v22  ;;  %v1974_v21 = vunpack.c.l.bf16 %v3794_v15  ;;  %v1992_v15 = vunpack.c.l.bf16 %v3825_v37  ;;  %v3287_v43 = vld [vmem:[#allocation5 + $0x228] sm:$0xff]  }
 0x100   :  { %2972 = vmatpush3.bf16.msra.mxu1 %v3264_v60  ;;  %2979 = vmatprep.subr.bf16.mxu0 %v3265_v25  ;;  %v2188_v52 = vrot.slane %v2187_v0, 2  ;;  %v2150_v60 = vadd.f32 %v2149_v44, %v2148_v32  ;;  %v2194_v10 = vadd.f32 %v2193_v5, %v1944_v24  ;;  %v3280_v25 = vld [vmem:[#allocation5 + $0x298] sm:$0xff]   ;;  %v2125_v53 = vrot.slane %v2124_v12, 1  ;;  %v3288_v13 = vld [vmem:[#allocation5 + $0x2a8] sm:$0xff]   ;;  %v3289_v32 = vld [vmem:[#allocation5 + $0x270] sm:$0xff]  }
 0x101   :  { %3001 = vmatprep.subr.bf16.mxu1 %v3266_v35  ;;  %v2211_v48 = vadd.f32 %v2210_v11, %v2009_v26  ;;  %v3281_v35 = vld [vmem:[#allocation5 + $0x260] sm:$0xff]   ;;  %v2006_v18 = vunpack.c.l.bf16 %v3808_v49  ;;  %v3294_v11 = vld [vmem:[#allocation5 + $0x2f8] sm:$0xff]  }
 0x102   :  { %2363 = vmatmul.mubr.bf16.vlgmr.msra.gmra.mrb[20].mxu0 %v2238_v45  ;;  %v1942_v45 = vunpack.c.l.bf16 %v3786_v28  ;;  %v1960_v28 = vunpack.c.l.bf16 %v3817_v46  ;;  %v2189_v22 = vadd.f32 %v2188_v52, %v2187_v0  ;;  %v2151_v46 = vrot.slane %v2150_v60, 1  ;;  %v3298_v5 = vld [vmem:[#allocation5 + $0x3c0] sm:$0xff]  }
 0x103   :  { %2403 = vmatmul.mubr.bf16.vlgmr.msra.gmra.mrb[20].mxu1 %v2240_v16  ;;  %2980 = vmatpush3.bf16.msra.mxu0 %v3267_v40  ;;  %v3278_v16 = vld [vmem:[#allocation5 + $0x2d8] sm:$0xff]   ;;  %v2212_v38 = vrot.slane %v2211_v48, 4  ;;  %v1990_v40 = vunpack.c.l.bf16 %v3803_v8  ;;  %v2008_v8 = vunpack.c.l.bf16 %v3830_v4  ;;  %v3300_v52 = vld [vmem:[#allocation5 + $0x380] sm:$0xff]  }
 0x104   :  { %3002 = vmatpush3.bf16.msra.mxu1 %v3268_v57  ;;  %2981 = vmatprep.subr.bf16.mxu0 %v3269_v63  ;;  %v2168_v1 = vadd.f32 %v2167_v42, %v1942_v45  ;;  %v2195_v54 = vadd.f32 %v2194_v10, %v1960_v28  ;;  %v2190_v57 = vrot.slane %v2189_v22, 1  ;;  %v3295_v4 = vld [vmem:[#allocation5 + $0x238] sm:$0xff]   ;;  %v3297_v42 = vld [vmem:[#allocation5 + $0x340] sm:$0xff]  }
 0x105   :  { %3003 = vmatprep.subr.bf16.mxu1 %v3270_v19  ;;  %2442 = vmatprep.mubr.bf16.mxu0 %v2243_v27  ;;  %v2213_v36 = vadd.f32 %v2212_v38, %v2211_v48  ;;  %v1976_v27 = vunpack.c.l.bf16 %v3822_v56  ;;  %v2126_v19 = vadd.f32 %v2125_v53, %v2124_v12  ;;  %v2152_v56 = vadd.f32 %v2151_v46, %v2150_v60  ;;  %v3296_v48 = vld [vmem:[#allocation5 + $0x2b8] sm:$0xff]   ;;  %v3304_v46 = vld [vmem:[#allocation5 + $0x388] sm:$0xff]  }
 0x106   :  { %2482 = vmatprep.mubr.bf16.mxu1 %v2245_v33  ;;  %v2169_v41 = vadd.f32 %v2168_v1, %v1958_v30  ;;  %v3283_v33 = vld [vmem:[#allocation5 + $0x220] sm:$0xff]   ;;  %v2191_v26 = vadd.f32 %v2190_v57, %v2189_v22  ;;  %v3302_v1 = vld [vmem:[#allocation5 + $0x3c8] sm:$0xff]  }
 0x107   :  { %2982 = vmatpush3.bf16.msra.mxu0 %v3271_v20  ;;  %v2214_v47 = vrot.slane %v2213_v36, 2  ;;  %v2196_v7 = vadd.f32 %v2195_v54, %v1976_v27  ;;  %v2226_v37 = vmul.f32 0.015625, %v2126_v19  ;;  %v2228_v51 = vmul.f32 0.015625, %v2152_v56  ;;  %v3299_v30 = vld [vmem:[#allocation5 + $0x300] sm:$0xff]   ;;  %v3303_v27 = vld [vmem:[#allocation5 + $0x308] sm:$0xff]   ;;  %v3312_v19 = vld [vmem:[#allocation5 + $0x398] sm:$0xff]  }
 0x108   :  { %3004 = vmatpush3.bf16.msra.mxu1 %v3272_v50  ;;  %2983 = vmatprep.subr.bf16.mxu0 %v3273_v23  ;;  %v2170_v14 = vadd.f32 %v2169_v41, %v1974_v21  ;;  %v3291_v50 = vld [vmem:[#allocation5 + $0x230] sm:$0xff]   ;;  %v2231_v3 = vmul.f32 0.015625, %v2191_v26  ;;  %v3313_v56 = vld [vmem:[#allocation5 + $0x360] sm:$0xff]  }
 0x109   :  { %3005 = vmatprep.subr.bf16.mxu1 %v3274_v61  ;;  %v2215_v2 = vadd.f32 %v2214_v47, %v2213_v36  ;;  %v2197_v20 = vadd.f32 %v2196_v7, %v1992_v15  ;;  %v3292_v23 = vld [vmem:[#allocation5 + $0x2b0] sm:$0xff]   ;;  %v3293_v61 = vld [vmem:[#allocation5 + $0x278] sm:$0xff]   ;;  %v2242_v45 = vpack.c.bf16 %v2226_v37, %v2226_v37  ;;  %v2244_v49 = vpack.c.bf16 %v2228_v51, %v2228_v51  ;;  %v3301_v36 = vld [vmem:[#allocation5 + $0x348] sm:$0xff]  }
 0x10a   :  { %v2171_v17 = vadd.f32 %v2170_v14, %v1990_v40  ;;  %v3306_v41 = vld [vmem:[#allocation5 + $0x3d0] sm:$0xff]   ;;  %v3310_v40 = vld [vmem:[#allocation5 + $0x3d8] sm:$0xff]   ;;  %v3314_v14 = vld [vmem:[#allocation5 + $0x3e0] sm:$0xff]  }
 0x10b   :  { %2984 = vmatpush3.bf16.msra.mxu0 %v3275_v59  ;;  %v2216_v63 = vrot.slane %v2215_v2, 1  ;;  %v2198_v24 = vadd.f32 %v2197_v20, %v2008_v8  ;;  %v2247_v59 = vpack.c.bf16 %v2231_v3, %v2231_v3  ;;  %v3320_v37 = vld [vmem:[#allocation5 + $0x3a8] sm:$0xff]   ;;  %v3321_v51 = vld [vmem:[#allocation5 + $0x370] sm:$0xff]   ;;  %v3326_v3 = vld [vmem:[#allocation5 + $0x3f8] sm:$0xff]  }
 0x10c   :  { %3006 = vmatpush3.bf16.msra.mxu1 %v3276_v31  ;;  %2985 = vmatprep.subr.bf16.mxu0 %v3277_v9  ;;  %v2172_v0 = vadd.f32 %v2171_v17, %v2006_v18  ;;  %v3318_v18 = vld [vmem:[#allocation5 + $0x3e8] sm:$0xff]   ;;  %v3322_v17 = vld [vmem:[#allocation5 + $0x3f0] sm:$0xff]  }
 0x10d   :  { %3007 = vmatprep.subr.bf16.mxu1 %v3278_v16  ;;  %v2217_v6 = vadd.f32 %v2216_v63, %v2215_v2  ;;  %v2199_v12 = vrot.slane %v2198_v24, 4  ;;  %v3305_v2 = vld [vmem:[#allocation5 + $0x350] sm:$0xff]   ;;  %v3311_v63 = vld [vmem:[#allocation5 + $0x318] sm:$0xff]  }
 0x10e   :  { %v2173_v38 = vrot.slane %v2172_v0, 4 }
 0x10f   :  { %2986 = vmatpush3.bf16.msra.mxu0 %v3279_v55  ;;  %v2233_v44 = vmul.f32 0.015625, %v2217_v6  ;;  %v2200_v22 = vadd.f32 %v2199_v12, %v2198_v24  ;;  %v3319_v6 = vld [vmem:[#allocation5 + $0x328] sm:$0xff]  }
 0x110   :  { %3008 = vmatpush3.bf16.msra.mxu1 %v3280_v25  ;;  %2987 = vmatprep.subr.bf16.mxu0 %v3281_v35  ;;  %v2174_v21 = vadd.f32 %v2173_v38, %v2172_v0  ;;  %v3328_v0 = vld [vmem:[#allocation5 + $0x3b8] sm:$0xff]  }
 0x111   :  { %3009 = vmatprep.subr.bf16.mxu1 %v3282_v62  ;;  %v2249_v31 = vpack.c.bf16 %v2233_v44, %v2233_v44 }
 0x112   :  { %v2175_v54 = vrot.slane %v2174_v21, 2 }
 0x113   :  { %2988 = vmatpush3.bf16.msra.mxu0 %v3283_v33  ;;  %v2201_v33 = vrot.slane %v2200_v22, 2 }
 0x114   :  { %3010 = vmatpush3.bf16.msra.mxu1 %v3284_v58  ;;  %2989 = vmatprep.subr.bf16.mxu0 %v3285_v34  ;;  %v3307_v58 = vld [vmem:[#allocation5 + $0x310] sm:$0xff]   ;;  %v2176_v57 = vadd.f32 %v2175_v54, %v2174_v21 }
 0x115   :  { %3011 = vmatprep.subr.bf16.mxu1 %v3286_v29  ;;  %v3308_v34 = vld [vmem:[#allocation5 + $0x390] sm:$0xff]   ;;  %v3309_v29 = vld [vmem:[#allocation5 + $0x358] sm:$0xff]   ;;  %v2202_v15 = vadd.f32 %v2201_v33, %v2200_v22 }
 0x116   :  { %v2177_v7 = vrot.slane %v2176_v57, 1 }
 0x117   :  { %2990 = vmatpush3.bf16.msra.mxu0 %v3287_v43  ;;  %v2203_v43 = vrot.slane %v2202_v15, 1 }
 0x118   :  { %3012 = vmatpush3.bf16.msra.mxu1 %v3288_v13  ;;  %2991 = vmatprep.subr.bf16.mxu0 %v3289_v32  ;;  %v3315_v13 = vld [vmem:[#allocation5 + $0x320] sm:$0xff]   ;;  %v2178_v26 = vadd.f32 %v2177_v7, %v2176_v57 }
 0x119   :  { %3013 = vmatprep.subr.bf16.mxu1 %v3290_v39  ;;  %v3316_v32 = vld [vmem:[#allocation5 + $0x3a0] sm:$0xff]   ;;  %v3317_v39 = vld [vmem:[#allocation5 + $0x368] sm:$0xff]   ;;  %v2204_v8 = vadd.f32 %v2203_v43, %v2202_v15 }
 0x11a   :  { %v2230_v20 = vmul.f32 0.015625, %v2178_v26 }
 0x11b   :  { %2992 = vmatpush3.bf16.msra.mxu0 %v3291_v50  ;;  %v2232_v50 = vmul.f32 0.015625, %v2204_v8 }
 0x11c   :  { %3014 = vmatpush3.bf16.msra.mxu1 %v3292_v23  ;;  %2993 = vmatprep.subr.bf16.mxu0 %v3293_v61  ;;  %v3323_v23 = vld [vmem:[#allocation5 + $0x330] sm:$0xff]   ;;  %v2246_v44 = vpack.c.bf16 %v2230_v20, %v2230_v20 }
 0x11d   :  { %3015 = vmatprep.subr.bf16.mxu1 %v3294_v11  ;;  %v3324_v61 = vld [vmem:[#allocation5 + $0x3b0] sm:$0xff]   ;;  %v3325_v11 = vld [vmem:[#allocation5 + $0x378] sm:$0xff]  }
 0x11f   :  { %2994 = vmatpush3.bf16.msra.mxu0 %v3295_v4 }
 0x120   :  { %3016 = vmatpush3.bf16.msra.mxu1 %v3296_v48  ;;  %3023 = vmatprep.subr.bf16.mxu0 %v3297_v42 }
 0x121   :  { %3045 = vmatprep.subr.bf16.mxu1 %v3298_v5 }
 0x122   :  { %2443 = vmatmul.mubr.bf16.vlgmr.msra.gmra.mrb[24].mxu0 %v2242_v45  ;;  %v2248_v45 = vpack.c.bf16 %v2232_v50, %v2232_v50 }
 0x123   :  { %2483 = vmatmul.mubr.bf16.vlgmr.msra.gmra.mrb[24].mxu1 %v2244_v49  ;;  %3024 = vmatpush3.bf16.msra.mxu0 %v3299_v30  ;;  %v3327_v49 = vld [vmem:[#allocation5 + $0x338] sm:$0xff]  }
 0x124   :  { %3046 = vmatpush3.bf16.msra.mxu1 %v3300_v52  ;;  %3025 = vmatprep.subr.bf16.mxu0 %v3301_v36 }
 0x125   :  { %3047 = vmatprep.subr.bf16.mxu1 %v3302_v1  ;;  %2522 = vmatprep.mubr.bf16.mxu0 %v2247_v59 }
 0x126   :  { %2562 = vmatprep.mubr.bf16.mxu1 %v2249_v31 }
 0x127   :  { %3026 = vmatpush3.bf16.msra.mxu0 %v3303_v27 }
 0x128   :  { %3048 = vmatpush3.bf16.msra.mxu1 %v3304_v46  ;;  %3027 = vmatprep.subr.bf16.mxu0 %v3305_v2 }
 0x129   :  { %3049 = vmatprep.subr.bf16.mxu1 %v3306_v41 }
 0x12b   :  { %3028 = vmatpush3.bf16.msra.mxu0 %v3307_v58 }
 0x12c   :  { %3050 = vmatpush3.bf16.msra.mxu1 %v3308_v34  ;;  %3029 = vmatprep.subr.bf16.mxu0 %v3309_v29 }
 0x12d   :  { %3051 = vmatprep.subr.bf16.mxu1 %v3310_v40 }
 0x12f   :  { %v2753_v16 = vpop.f32.mrb[0].mxu1  ;;  %3030 = vmatpush3.bf16.msra.mxu0 %v3311_v63 }
 0x130   :  { %v2754_v60 = vpop.f32.mrb[1].mxu1  ;;  %3052 = vmatpush3.bf16.msra.mxu1 %v3312_v19  ;;  %3031 = vmatprep.subr.bf16.mxu0 %v3313_v56 }
 0x131   :  { %v2755_v55 = vadd.f32 %v2754_v60, %v2753_v16  ;;  %v2756_v35 = vpop.f32.mrb[2].mxu1  ;;  %3053 = vmatprep.subr.bf16.mxu1 %v3314_v14 }
 0x132   :  { %v2731_v9 = vpop.f32.mrb[0].mxu0  ;;  %v2757_v47 = vpop.f32.mrb[3].mxu1 }
 0x133   :  { %v2732_v28 = vpop.f32.mrb[1].mxu0  ;;  %3032 = vmatpush3.bf16.msra.mxu0 %v3315_v13 }
 0x134   :  { %v2733_v10 = vadd.f32 %v2732_v28, %v2731_v9  ;;  %v2734_v25 = vpop.f32.mrb[2].mxu0  ;;  %3054 = vmatpush3.bf16.msra.mxu1 %v3316_v32  ;;  %3033 = vmatprep.subr.bf16.mxu0 %v3317_v39 }
 0x135   :  { %v2735_v62 = vpop.f32.mrb[3].mxu0  ;;  %3055 = vmatprep.subr.bf16.mxu1 %v3318_v18 }
 0x136   :  { %v3846_v53 = vadd.f32 %v2755_v55, %v2733_v10 }
 0x137   :  { %3034 = vmatpush3.bf16.msra.mxu0 %v3319_v6 }
 0x138   :  { %3056 = vmatpush3.bf16.msra.mxu1 %v3320_v37  ;;  %3035 = vmatprep.subr.bf16.mxu0 %v3321_v51 }
 0x139   :  { %3057 = vmatprep.subr.bf16.mxu1 %v3322_v17 }
 0x13b   :  { %3036 = vmatpush3.bf16.msra.mxu0 %v3323_v23 }
 0x13c   :  { %3058 = vmatpush3.bf16.msra.mxu1 %v3324_v61  ;;  %3037 = vmatprep.subr.bf16.mxu0 %v3325_v11 }
 0x13d   :  { %3059 = vmatprep.subr.bf16.mxu1 %v3326_v3 }
 0x13f   :  { %3038 = vmatpush3.bf16.msra.mxu0 %v3327_v49 }
 0x140   :  { %3060 = vmatpush3.bf16.msra.mxu1 %v3328_v0 }
 0x142   :  { %2523 = vmatmul.mubr.bf16.vlgmr.msra.gmra.mrb[28].mxu0 %v2246_v44 }
 0x143   :  { %2563 = vmatmul.mubr.bf16.vlgmr.msra.gmra.mrb[28].mxu1 %v2248_v45 }
 0x151   :  { %v2797_v4 = vpop.f32.mrb[4].mxu1 }
 0x152   :  { %v2775_v24 = vpop.f32.mrb[4].mxu0  ;;  %v2798_v42 = vpop.f32.mrb[5].mxu1 }
 0x153   :  { %v2776_v48 = vpop.f32.mrb[5].mxu0  ;;  %v2799_v59 = vadd.f32 %v2798_v42, %v2797_v4  ;;  %v2800_v9 = vpop.f32.mrb[6].mxu1 }
 0x154   :  { %v2777_v5 = vadd.f32 %v2776_v48, %v2775_v24  ;;  %v2778_v31 = vpop.f32.mrb[6].mxu0  ;;  %v2801_v38 = vpop.f32.mrb[7].mxu1 }
 0x155   :  { %v2779_v16 = vpop.f32.mrb[7].mxu0 }
 0x156   :  { %v1612_v12 = vadd.f32 %v2777_v5, %v3846_v53 }
 0x158   :  { %v1652_v30 = vadd.f32 %v2799_v59, %v1612_v12 }
 0x172   :  { %v2819_v52 = vpop.f32.mrb[8].mxu0 }
 0x173   :  { %v2841_v28 = vpop.f32.mrb[8].mxu1  ;;  %v2820_v60 = vpop.f32.mrb[9].mxu0 }
 0x174   :  { %v2821_v36 = vadd.f32 %v2820_v60, %v2819_v52  ;;  %v2842_v1 = vpop.f32.mrb[9].mxu1  ;;  %v2822_v10 = vpop.f32.mrb[10].mxu0 }
 0x175   :  { %v2843_v55 = vadd.f32 %v2842_v1, %v2841_v28  ;;  %v2844_v25 = vpop.f32.mrb[10].mxu1  ;;  %v2823_v35 = vpop.f32.mrb[11].mxu0 }
 0x176   :  { %v1692_v62 = vadd.f32 %v2821_v36, %v1652_v30  ;;  %v2845_v47 = vpop.f32.mrb[11].mxu1 }
 0x178   :  { %v1732_v21 = vadd.f32 %v2843_v55, %v1692_v62 }
 0x195   :  { %v2863_v22 = vpop.f32.mrb[12].mxu0  ;;  %v2885_v27 = vpop.f32.mrb[12].mxu1 }
 0x196   :  { %v2864_v46 = vpop.f32.mrb[13].mxu0  ;;  %v2886_v2 = vpop.f32.mrb[13].mxu1 }
 0x197   :  { %v2865_v41 = vadd.f32 %v2864_v46, %v2863_v22  ;;  %v2887_v54 = vadd.f32 %v2886_v2, %v2885_v27  ;;  %v2866_v53 = vpop.f32.mrb[14].mxu0  ;;  %v2888_v33 = vpop.f32.mrb[14].mxu1 }
 0x198   :  { %v2867_v58 = vpop.f32.mrb[15].mxu0  ;;  %v2889_v34 = vpop.f32.mrb[15].mxu1 }
 0x199   :  { %v1772_v29 = vadd.f32 %v2865_v41, %v1732_v21 }
 0x19b   :  { %v1812_v40 = vadd.f32 %v2887_v54, %v1772_v29 }
 0x19d   :  { %1817 = vst [vmem:[#allocation7] sm:$0x1] %v1812_v40 }
 0x1b5   :  { %v2907_v57 = vpop.f32.mrb[16].mxu0 }
 0x1b6   :  { %v2929_v15 = vpop.f32.mrb[16].mxu1  ;;  %v2908_v63 = vpop.f32.mrb[17].mxu0 }
 0x1b7   :  { %v2930_v19 = vpop.f32.mrb[17].mxu1  ;;  %v2909_v56 = vadd.f32 %v2908_v63, %v2907_v57  ;;  %v2910_v7 = vpop.f32.mrb[18].mxu0 }
 0x1b8   :  { %v2931_v14 = vadd.f32 %v2930_v19, %v2929_v15  ;;  %v2932_v43 = vpop.f32.mrb[18].mxu1  ;;  %v2911_v13 = vpop.f32.mrb[19].mxu0 }
 0x1b9   :  { %v2933_v32 = vpop.f32.mrb[19].mxu1 }
 0x1ba   :  { %v2325_v39 = vadd.f32 %v2931_v14, %v2909_v56 }
 0x1d5   :  { %v2951_v18 = vpop.f32.mrb[20].mxu0 }
 0x1d6   :  { %v2973_v26 = vpop.f32.mrb[20].mxu1  ;;  %v2952_v8 = vpop.f32.mrb[21].mxu0 }
 0x1d7   :  { %v2974_v6 = vpop.f32.mrb[21].mxu1  ;;  %v2953_v37 = vadd.f32 %v2952_v8, %v2951_v18  ;;  %v2954_v17 = vpop.f32.mrb[22].mxu0 }
 0x1d8   :  { %v2975_v51 = vadd.f32 %v2974_v6, %v2973_v26  ;;  %v2976_v20 = vpop.f32.mrb[22].mxu1  ;;  %v2955_v50 = vpop.f32.mrb[23].mxu0 }
 0x1d9   :  { %v2977_v23 = vpop.f32.mrb[23].mxu1  ;;  %v2365_v61 = vadd.f32 %v2953_v37, %v2325_v39 }
 0x1db   :  { %v2405_v11 = vadd.f32 %v2975_v51, %v2365_v61 }
 0x1f5   :  { %v2995_v3 = vpop.f32.mrb[24].mxu0 }
 0x1f6   :  { %v3017_v44 = vpop.f32.mrb[24].mxu1  ;;  %v2996_v45 = vpop.f32.mrb[25].mxu0 }
 0x1f7   :  { %v3018_v49 = vpop.f32.mrb[25].mxu1  ;;  %v2997_v0 = vadd.f32 %v2996_v45, %v2995_v3  ;;  %v2998_v4 = vpop.f32.mrb[26].mxu0 }
 0x1f8   :  { %v3019_v24 = vadd.f32 %v3018_v49, %v3017_v44  ;;  %v3020_v48 = vpop.f32.mrb[26].mxu1  ;;  %v2999_v42 = vpop.f32.mrb[27].mxu0 }
 0x1f9   :  { %v3021_v5 = vpop.f32.mrb[27].mxu1  ;;  %v2445_v59 = vadd.f32 %v2997_v0, %v2405_v11 }
 0x1fb   :  { %v2485_v31 = vadd.f32 %v3019_v24, %v2445_v59 }
 0x215   :  { %v3039_v9 = vpop.f32.mrb[28].mxu0 }
 0x216   :  { %v3061_v16 = vpop.f32.mrb[28].mxu1  ;;  %v3040_v38 = vpop.f32.mrb[29].mxu0 }
 0x217   :  { %v3062_v12 = vpop.f32.mrb[29].mxu1  ;;  %v3041_v30 = vadd.f32 %v3040_v38, %v3039_v9  ;;  %v3042_v28 = vpop.f32.mrb[30].mxu0 }
 0x218   :  { %v3063_v52 = vadd.f32 %v3062_v12, %v3061_v16  ;;  %v3064_v60 = vpop.f32.mrb[30].mxu1  ;;  %v3043_v36 = vpop.f32.mrb[31].mxu0 }
 0x219   :  { %v3065_v1 = vpop.f32.mrb[31].mxu1  ;;  %v2525_v10 = vadd.f32 %v3041_v30, %v2485_v31 }
 0x21b   :  { %v2565_v55 = vadd.f32 %v3063_v52, %v2525_v10 }
 0x21d   :  { %2570 = vst [vmem:[#allocation7 + $0x1] sm:$0x1] %v2565_v55 }
 0x21e   :  { %3384 = shalt.err (!%p3381_p6)
}
 0x21f   :  { %s3385_s11 = scalar_lea.hbm %s3863_s2, 32 }
 0x220   :  { %p3386_p7 = scmp.ne.s32.totalorder %s3863_s2, %s3385_s11  ;;  %p3389_p8 = scmp.lt.u32.totalorder %s3385_s11, %s3863_s2 }
 0x222   :  { %p3391_p9 = pnand %p3389_p8, %p3386_p7 }
 0x224   :  { %3394 = shalt.err (!%p3391_p9)
}
 0x225   :  { %2580 = dma.vmem_to_hbm [thread:$0]  %s2578_s7, 32, %s3863_s2, [#allocation4]  }
 0x226   :  { %3399 = dma.done.wait [#allocation4], 32  }
 0x227   :  { %3400 = vsyncadd [#allocation4], 4294967264 }
 0x228   :  { %2584 = vsyncpa [#allocation3], 1 }
 0x229   :  { %2585 = vsyncpa [#allocation6], 1 }
 0x22a   :  { %2586 = vsyncpa [#allocation4], 1 }

</bundles_post_ra>
